<compile_context>
chip_gen: v7x
topology: tpu7x:2x2x1
jax: 0.10.0
libtpu: 0.0.40
codegen_flags: <defaults>
</compile_context>

<pallas_src>
import functools

import jax
import jax.numpy as jnp
import numpy as np
from jax import lax
from jax.experimental import pallas as pl
from jax.experimental.pallas import tpu as pltpu

_SUB = 8  # timesteps per interleaved gi sub-block == inner-loop unroll factor


def _round_up(x, m):
    return ((x + m - 1) // m) * m


def gru_kernel(x_ref, h0_ref, wih_ref, whh_ref, bih_ref, bhn_ref,
               out_ref, gi_scr, h_carry, *, sub):
    """One sequence chunk of one batch tile.

    Shapes (per grid step, all VMEM resident):
      x_ref   : (chunk*Bt, I)      time-major input chunk (f32)
      h0_ref  : (Bt, Hp)           initial hidden (f32)
      wih_ref : (I, 3*Hp)          W_ih^T, gate blocks 128-lane aligned (f32/bf16)
      whh_ref : (Hp, 3*Hp)         W_hh^T, gate blocks 128-lane aligned (f32)
      bih_ref : (1, 3*Hp)          b_ih with b_hr/b_hz folded in (f32)
      bhn_ref : (1, Hp)            b_hn (stays inside the r-gated n term)
      out_ref : (chunk*Bt, Hp)     hidden states of this chunk (f32)
      gi_scr  : (chunk*Bt, 3*Hp)   input-projection scratch (f32)
      h_carry : (Bt, Hp)           hidden carried across chunks (f32)
    """
    c = pl.program_id(1)
    Bt, Hp = h0_ref.shape
    n_sub = out_ref.shape[0] // (sub * Bt)
    mm_dtype = wih_ref.dtype

    @pl.when(c == 0)
    def _():
        h_carry[...] = h0_ref[...]

    # Loop-invariant loads / broadcasts hoisted (JAX does not CSE these in loops).
    wih = wih_ref[...]
    whh = whh_ref[...]
    bih = bih_ref[...]
    bhn = jnp.broadcast_to(bhn_ref[...], (Bt, Hp))

    def gi_block(s):
        # Input projection for sub-block s: one throughput MXU matmul covering
        # `sub` timesteps.  Off the serial critical path.
        row = s * sub * Bt
        if not isinstance(row, int):
            row = pl.multiple_of(row, sub * Bt)
        xs = x_ref[pl.ds(row, sub * Bt), :].astype(mm_dtype)
        gi_scr[pl.ds(row, sub * Bt), :] = (
            jnp.dot(xs, wih, preferred_element_type=jnp.float32) + bih)

    # Prologue: input projection for the first sub-block only.
    gi_block(0)

    def sub_body(s, h):
        # Interleave: issue sub-block s+1's gi matmul now so its MXU pushes
        # hide under this sub-block's sigmoid/tanh (EUP) latency.
        if n_sub > 1:
            @pl.when(s + 1 < n_sub)
            def _():
                gi_block(s + 1)

        def step(t, h):
            row = pl.multiple_of((s * sub + t) * Bt, Bt)
            gi = gi_scr[pl.ds(row, Bt), :]
            # Only the hidden projection remains on the serial path; b_hr/b_hz
            # were folded into bih at pack time.
            gh = jnp.dot(h, whh, preferred_element_type=jnp.float32)
            r = jax.nn.sigmoid(gi[:, 0 * Hp:1 * Hp] + gh[:, 0 * Hp:1 * Hp])
            z = jax.nn.sigmoid(gi[:, 1 * Hp:2 * Hp] + gh[:, 1 * Hp:2 * Hp])
            n = jnp.tanh(gi[:, 2 * Hp:3 * Hp] + r * (gh[:, 2 * Hp:3 * Hp] + bhn))
            h_new = n + z * (h - n)              # == (1-z)*n + z*h, one fewer VPU op
            # Lane-dense full-vreg (Bt,128) store into the pipelined out block.
            out_ref[pl.ds(row, Bt), :] = h_new.astype(out_ref.dtype)
            return h_new

        # Fixed unroll: scheduler can overlap step t's store / t+1's gi load &
        # MXU push with step t's EUP latency.
        return lax.fori_loop(0, sub, step, h, unroll=True)

    h_final = lax.fori_loop(0, n_sub, sub_body, h_carry[...])
    h_carry[...] = h_final


def pack_gru_params(w_ih, w_hh, b_ih, b_hh, *, matmul_dtype=jnp.float32):
    """Repack torch-layout GRU params ONCE (hoisted out of the forward)."""
    H3, I = w_ih.shape
    H = H3 // 3
    Hp = _round_up(H, 128)   # lane-dense, gate-aligned tiles
    # wih_p[i, g*Hp + h] = W_ih[g*H + h, i]   (zero-padded H -> Hp)
    wih_p = jnp.pad(w_ih.reshape(3, H, I).transpose(2, 0, 1),
                    ((0, 0), (0, 0), (0, Hp - H))).reshape(I, 3 * Hp)
    whh_p = jnp.pad(w_hh.reshape(3, H, H).transpose(2, 0, 1),
                    ((0, Hp - H), (0, 0), (0, Hp - H))).reshape(Hp, 3 * Hp)
    b_i = b_ih.reshape(3, H)
    b_h = b_hh.reshape(3, H)
    # r/z gates: hidden bias sits OUTSIDE the gating -> fold b_hr/b_hz into the
    # input-side bias.  n gate: b_hn is multiplied by r -> stays separate.
    b_fold = jnp.stack([b_i[0] + b_h[0], b_i[1] + b_h[1], b_i[2]], axis=0)
    bih_p = jnp.pad(b_fold, ((0, 0), (0, Hp - H))).reshape(1, 3 * Hp)
    bhn_p = jnp.pad(b_h[2][None, :], ((0, 0), (0, Hp - H)))
    return {
        "wih": wih_p.astype(matmul_dtype),   # MXU throughput path (bf16 ok)
        "whh": whh_p.astype(jnp.float32),    # serial recurrence stays f32
        "bih": bih_p.astype(jnp.float32),
        "bhn": bhn_p.astype(jnp.float32),
        "H": H, "I": I, "Hp": Hp,
    }


def encoder_rnn_forward(x, h0, params, *, chunk_hint=256):
    """EncoderRNN.forward with n_layers=1: (output, hidden) = GRU(input, hidden)."""
    S, B, I = x.shape
    H, Hp = params["H"], params["Hp"]
    assert I == params["I"]

    # Batch rows: fill the MXU up to 128 sublanes per tile before splitting;
    # above that, a leading "parallel" batch-tile axis (v7x: 2 TensorCores).
    Bt = min(_round_up(B, 8), 128)
    n_bt = pl.cdiv(_round_up(B, 8), Bt)
    Bp = n_bt * Bt

    # Sequence chunking: cap VMEM (sized for v7x's 64 MiB physical VMEM /
    # v5e's small scoped default) and let BlockSpec pipelining hide x-in /
    # out-back HBM traffic behind the recurrence.
    bytes_per_step = Bt * (3 * Hp + 2 * Hp + 2 * I) * 4   # gi + 2x out + 2x x
    max_chunk = max(_SUB, (24 * 1024 * 1024) // bytes_per_step)
    chunk = min(chunk_hint, max_chunk, _round_up(S, _SUB))
    chunk = max(_SUB, (chunk // _SUB) * _SUB)
    Sp = _round_up(S, chunk)
    n_chunks = Sp // chunk

    # Batch-tile-major layout: (n_bt, Sp*Bt, I); rows are time-major within a
    # tile so each chunk block is one contiguous lane-dense slab.
    x_p = jnp.pad(x.astype(jnp.float32), ((0, Sp - S), (0, Bp - B), (0, 0)))
    x_p = x_p.reshape(Sp, n_bt, Bt, I).transpose(1, 0, 2, 3).reshape(n_bt, Sp * Bt, I)
    h0_p = jnp.pad(h0[0].astype(jnp.float32), ((0, Bp - B), (0, Hp - H)))

    out_p = pl.pallas_call(
        functools.partial(gru_kernel, sub=_SUB),
        out_shape=jax.ShapeDtypeStruct((n_bt, Sp * Bt, Hp), jnp.float32),
        grid_spec=pltpu.PrefetchScalarGridSpec(
            num_scalar_prefetch=0,
            grid=(n_bt, n_chunks),
            in_specs=[
                pl.BlockSpec((None, chunk * Bt, I), lambda b, c: (b, c, 0)),
                pl.BlockSpec((Bt, Hp), lambda b, c: (b, 0)),
                pl.BlockSpec((I, 3 * Hp), lambda b, c: (0, 0)),
                pl.BlockSpec((Hp, 3 * Hp), lambda b, c: (0, 0)),
                pl.BlockSpec((1, 3 * Hp), lambda b, c: (0, 0)),
                pl.BlockSpec((1, Hp), lambda b, c: (0, 0)),
            ],
            out_specs=pl.BlockSpec((None, chunk * Bt, Hp), lambda b, c: (b, c, 0)),
            scratch_shapes=[
                pltpu.VMEM((chunk * Bt, 3 * Hp), jnp.float32),   # gi scratch
                pltpu.VMEM((Bt, Hp), jnp.float32),               # h carried across chunks
            ],
        ),
        compiler_params=pltpu.CompilerParams(
            dimension_semantics=("parallel", "arbitrary"),
            vmem_limit_bytes=48 * 1024 * 1024,   # explicit; > v5e's 16 MiB default, < v7x 64 MiB
        ),
    )(x_p, h0_p, params["wih"], params["whh"], params["bih"], params["bhn"])

    out = out_p.reshape(n_bt, Sp, Bt, Hp).transpose(1, 0, 2, 3).reshape(Sp, Bp, Hp)
    out = out[:S, :B, :H]
    hn = out[S - 1:S]          # final hidden = last output, taken in f32 (no downcast)
    return out, hn


def gru_reference(x, h0, w_ih, w_hh, b_ih, b_hh):
    """Pure-JAX reference matching torch.nn.GRU."""
    H = h0.shape[-1]

    def step(h, x_t):
        gi = x_t @ w_ih.T + b_ih
        gh = h @ w_hh.T + b_hh
        r = jax.nn.sigmoid(gi[:, :H] + gh[:, :H])
        z = jax.nn.sigmoid(gi[:, H:2 * H] + gh[:, H:2 * H])
        n = jnp.tanh(gi[:, 2 * H:] + r * gh[:, 2 * H:])
        h_new = (1.0 - z) * n + z * h
        return h_new, h_new

    h_last, outs = lax.scan(step, h0[0], x)
    return outs, h_last[None]


if __name__ == "__main__":
    SEQ, BATCH, INPUT_SIZE, HIDDEN = 8, 2, 16, 32

    key = jax.random.PRNGKey(0)
    k_x, k_wih, k_whh, k_bih, k_bhh = jax.random.split(key, 5)

    # PyTorch GRU param init: U(-1/sqrt(H), 1/sqrt(H))
    bound = 1.0 / np.sqrt(HIDDEN)
    w_ih = jax.random.uniform(k_wih, (3 * HIDDEN, INPUT_SIZE), jnp.float32, -bound, bound)
    w_hh = jax.random.uniform(k_whh, (3 * HIDDEN, HIDDEN), jnp.float32, -bound, bound)
    b_ih = jax.random.uniform(k_bih, (3 * HIDDEN,), jnp.float32, -bound, bound)
    b_hh = jax.random.uniform(k_bhh, (3 * HIDDEN,), jnp.float32, -bound, bound)

    x = jax.random.normal(k_x, (SEQ, BATCH, INPUT_SIZE), jnp.float32)
    h0 = jnp.zeros((1, BATCH, HIDDEN), jnp.float32)   # EncoderRNN.initHidden()

    ref_out, ref_hn = gru_reference(x, h0, w_ih, w_hh, b_ih, b_hh)

    # f32 MXU path: tight numerical check.
    params_f32 = pack_gru_params(w_ih, w_hh, b_ih, b_hh, matmul_dtype=jnp.float32)
    out, hn = encoder_rnn_forward(x, h0, params_f32)
    out = jax.block_until_ready(out)
    hn = jax.block_until_ready(hn)
    np.testing.assert_allclose(np.asarray(out), np.asarray(ref_out), rtol=1e-5, atol=1e-5)
    np.testing.assert_allclose(np.asarray(hn), np.asarray(ref_hn), rtol=1e-5, atol=1e-5)

    # bf16-fed MXU path (input projection only; recurrence stays f32): loose check.
    params_bf16 = pack_gru_params(w_ih, w_hh, b_ih, b_hh, matmul_dtype=jnp.bfloat16)
    out_bf, hn_bf = encoder_rnn_forward(x, h0, params_bf16)
    out_bf = jax.block_until_ready(out_bf)
    np.testing.assert_allclose(np.asarray(out_bf), np.asarray(ref_out), rtol=5e-2, atol=5e-2)

    print("KERNEL_OK")
</pallas_src>

<mosaic_0001>
module attributes {stable_mosaic.version = 11 : i64} {
  func.func @gru_kernel(%arg0: i32, %arg1: i32, %arg2: memref<1x64x16xf32, #tpu.memory_space<vmem>>, %arg3: memref<8x128xf32, #tpu.memory_space<vmem>>, %arg4: memref<16x384xf32, #tpu.memory_space<vmem>>, %arg5: memref<128x384xf32, #tpu.memory_space<vmem>>, %arg6: memref<1x384xf32, #tpu.memory_space<vmem>>, %arg7: memref<1x128xf32, #tpu.memory_space<vmem>>, %arg8: memref<1x64x128xf32, #tpu.memory_space<vmem>>, %arg9: memref<64x384xf32, #tpu.memory_space<vmem>>, %arg10: memref<8x128xf32, #tpu.memory_space<vmem>>) attributes {dimension_semantics = [#tpu.dimension_semantics<parallel>, #tpu.dimension_semantics<arbitrary>], iteration_bounds = array<i64: 1, 1>, scalar_prefetch = 0 : i64, scratch_operands = 2 : i64, tpu.core_type = #tpu.core_type<tc>, window_params = [{transform_indices = @transform_0, window_bounds = array<i64: 1, 64, 16>}, {transform_indices = @transform_1, window_bounds = array<i64: 8, 128>}, {pipeline_mode = #tpu.pipeline_mode<synchronous>, transform_indices = @transform_2, window_bounds = array<i64: 16, 384>}, {pipeline_mode = #tpu.pipeline_mode<synchronous>, transform_indices = @transform_3, window_bounds = array<i64: 128, 384>}, {pipeline_mode = #tpu.pipeline_mode<synchronous>, transform_indices = @transform_4, window_bounds = array<i64: 1, 384>}, {pipeline_mode = #tpu.pipeline_mode<synchronous>, transform_indices = @transform_5, window_bounds = array<i64: 1, 128>}, {transform_indices = @transform_6, window_bounds = array<i64: 1, 64, 128>}]} {
    %c0_i32 = arith.constant 0 : i32
    %0 = arith.cmpi eq, %arg1, %c0_i32 : i32
    %1 = arith.extui %0 : i1 to i32
    %c0_i32_0 = arith.constant 0 : i32
    %2 = arith.cmpi ne, %1, %c0_i32_0 : i32
    scf.if %2 {
      %c0_84 = arith.constant 0 : index
      %c0_85 = arith.constant 0 : index
      %305 = vector.load %arg3[%c0_84, %c0_85] : memref<8x128xf32, #tpu.memory_space<vmem>>, vector<8x128xf32>
      %c0_86 = arith.constant 0 : index
      %c0_87 = arith.constant 0 : index
      %306 = vector.load %arg10[%c0_86, %c0_87] : memref<8x128xf32, #tpu.memory_space<vmem>>, vector<8x128xf32>
      tpu.vector_store %arg10[%c0_86, %c0_87], %305 {strides = array<i32>} : memref<8x128xf32, #tpu.memory_space<vmem>>, vector<8x128xf32>,
    } else {
    }
    %c0 = arith.constant 0 : index
    %c0_1 = arith.constant 0 : index
    %3 = vector.load %arg4[%c0, %c0_1] : memref<16x384xf32, #tpu.memory_space<vmem>>, vector<16x384xf32>
    %c0_2 = arith.constant 0 : index
    %c0_3 = arith.constant 0 : index
    %4 = vector.load %arg5[%c0_2, %c0_3] : memref<128x384xf32, #tpu.memory_space<vmem>>, vector<128x384xf32>
    %c0_4 = arith.constant 0 : index
    %c0_5 = arith.constant 0 : index
    %5 = vector.load %arg6[%c0_4, %c0_5] : memref<1x384xf32, #tpu.memory_space<vmem>>, vector<1x384xf32>
    %c0_6 = arith.constant 0 : index
    %c0_7 = arith.constant 0 : index
    %6 = vector.load %arg7[%c0_6, %c0_7] : memref<1x128xf32, #tpu.memory_space<vmem>>, vector<1x128xf32>
    %7 = vector.shape_cast %6 : vector<1x128xf32> to vector<1x128xf32>
    %8 = vector.broadcast %7 : vector<1x128xf32> to vector<8x128xf32>
    %c0_8 = arith.constant 0 : index
    %c0_9 = arith.constant 0 : index
    %c0_10 = arith.constant 0 : index
    %9 = vector.load %arg2[%c0_8, %c0_9, %c0_10] : memref<1x64x16xf32, #tpu.memory_space<vmem>>, vector<1x64x16xf32>
    %10 = vector.shape_cast %9 : vector<1x64x16xf32> to vector<64x16xf32>
    %cst = arith.constant dense<0.000000e+00> : vector<64x384xf32>
    %11 = tpu.matmul %10, %3, %cst {dimension_numbers = #tpu.dot_dimension_numbers<[1], [0], [0], [1], [0, 0, 1, 1], [], []>} : vector<64x16xf32>, vector<16x384xf32>, vector<64x384xf32> -> vector<64x384xf32>
    %12 = vector.broadcast %5 : vector<1x384xf32> to vector<64x384xf32>
    %13 = arith.addf %11, %12 : vector<64x384xf32>
    %c0_11 = arith.constant 0 : index
    %c0_12 = arith.constant 0 : index
    %14 = vector.load %arg9[%c0_11, %c0_12] : memref<64x384xf32, #tpu.memory_space<vmem>>, vector<64x384xf32>
    tpu.vector_store %arg9[%c0_11, %c0_12], %13 {strides = array<i32>} : memref<64x384xf32, #tpu.memory_space<vmem>>, vector<64x384xf32>,
    %c0_13 = arith.constant 0 : index
    %c0_14 = arith.constant 0 : index
    %15 = vector.load %arg10[%c0_13, %c0_14] : memref<8x128xf32, #tpu.memory_space<vmem>>, vector<8x128xf32>
    %c0_i32_15 = arith.constant 0 : i32
    %c0_i32_16 = arith.constant 0 : i32
    %c8_i32 = arith.constant 8 : i32
    %16 = arith.muli %c0_i32_15, %c8_i32 : i32
    %17 = arith.addi %16, %c0_i32_16 : i32
    %c8_i32_17 = arith.constant 8 : i32
    %18 = arith.muli %17, %c8_i32_17 : i32
    %19 = tpu.assume_multiple %18, 8 : i32
    %20 = arith.index_cast %19 : i32 to index
    %c0_18 = arith.constant 0 : index
    %21 = vector.load %arg9[%20, %c0_18] : memref<64x384xf32, #tpu.memory_space<vmem>>, vector<8x384xf32>
    %cst_19 = arith.constant dense<0.000000e+00> : vector<8x384xf32>
    %22 = tpu.matmul %15, %4, %cst_19 {dimension_numbers = #tpu.dot_dimension_numbers<[1], [0], [0], [1], [0, 0, 1, 1], [], []>} : vector<8x128xf32>, vector<128x384xf32>, vector<8x384xf32> -> vector<8x384xf32>
    %23 = vector.extract_strided_slice %21 {offsets = [0, 0], sizes = [8, 128], strides = [1, 1]} : vector<8x384xf32> to vector<8x128xf32>
    %24 = vector.extract_strided_slice %22 {offsets = [0, 0], sizes = [8, 128], strides = [1, 1]} : vector<8x384xf32> to vector<8x128xf32>
    %25 = arith.addf %23, %24 : vector<8x128xf32>
    %26 = arith.negf %25 : vector<8x128xf32>
    %27 = math.exp %26 : vector<8x128xf32>
    %cst_20 = arith.constant 1.000000e+00 : f32
    %28 = vector.broadcast %cst_20 : f32 to vector<8x128xf32>
    %29 = arith.addf %28, %27 : vector<8x128xf32>
    %30 = arith.divf %28, %29 : vector<8x128xf32>
    %31 = vector.extract_strided_slice %21 {offsets = [0, 128], sizes = [8, 128], strides = [1, 1]} : vector<8x384xf32> to vector<8x128xf32>
    %32 = vector.extract_strided_slice %22 {offsets = [0, 128], sizes = [8, 128], strides = [1, 1]} : vector<8x384xf32> to vector<8x128xf32>
    %33 = arith.addf %31, %32 : vector<8x128xf32>
    %34 = arith.negf %33 : vector<8x128xf32>
    %35 = math.exp %34 : vector<8x128xf32>
    %cst_21 = arith.constant 1.000000e+00 : f32
    %36 = vector.broadcast %cst_21 : f32 to vector<8x128xf32>
    %37 = arith.addf %36, %35 : vector<8x128xf32>
    %38 = arith.divf %36, %37 : vector<8x128xf32>
    %39 = vector.extract_strided_slice %21 {offsets = [0, 256], sizes = [8, 128], strides = [1, 1]} : vector<8x384xf32> to vector<8x128xf32>
    %40 = vector.extract_strided_slice %22 {offsets = [0, 256], sizes = [8, 128], strides = [1, 1]} : vector<8x384xf32> to vector<8x128xf32>
    %41 = arith.addf %40, %8 : vector<8x128xf32>
    %42 = arith.mulf %30, %41 : vector<8x128xf32>
    %43 = arith.addf %39, %42 : vector<8x128xf32>
    %44 = math.tanh %43 : vector<8x128xf32>
    %45 = arith.subf %15, %44 : vector<8x128xf32>
    %46 = arith.mulf %38, %45 : vector<8x128xf32>
    %47 = arith.addf %44, %46 : vector<8x128xf32>
    %c0_22 = arith.constant 0 : index
    %48 = arith.index_cast %19 : i32 to index
    %c0_23 = arith.constant 0 : index
    %49 = vector.load %arg8[%c0_22, %48, %c0_23] : memref<1x64x128xf32, #tpu.memory_space<vmem>>, vector<1x8x128xf32>
    %50 = vector.shape_cast %49 : vector<1x8x128xf32> to vector<8x128xf32>
    %51 = vector.shape_cast %47 : vector<8x128xf32> to vector<1x8x128xf32>
    tpu.vector_store %arg8[%c0_22, %48, %c0_23], %51 {strides = array<i32>} : memref<1x64x128xf32, #tpu.memory_space<vmem>>, vector<1x8x128xf32>,
    %c1_i32 = arith.constant 1 : i32
    %c8_i32_24 = arith.constant 8 : i32
    %52 = arith.muli %c0_i32_15, %c8_i32_24 : i32
    %53 = arith.addi %52, %c1_i32 : i32
    %c8_i32_25 = arith.constant 8 : i32
    %54 = arith.muli %53, %c8_i32_25 : i32
    %55 = tpu.assume_multiple %54, 8 : i32
    %56 = arith.index_cast %55 : i32 to index
    %c0_26 = arith.constant 0 : index
    %57 = vector.load %arg9[%56, %c0_26] : memref<64x384xf32, #tpu.memory_space<vmem>>, vector<8x384xf32>
    %cst_27 = arith.constant dense<0.000000e+00> : vector<8x384xf32>
    %58 = tpu.matmul %47, %4, %cst_27 {dimension_numbers = #tpu.dot_dimension_numbers<[1], [0], [0], [1], [0, 0, 1, 1], [], []>} : vector<8x128xf32>, vector<128x384xf32>, vector<8x384xf32> -> vector<8x384xf32>
    %59 = vector.extract_strided_slice %57 {offsets = [0, 0], sizes = [8, 128], strides = [1, 1]} : vector<8x384xf32> to vector<8x128xf32>
    %60 = vector.extract_strided_slice %58 {offsets = [0, 0], sizes = [8, 128], strides = [1, 1]} : vector<8x384xf32> to vector<8x128xf32>
    %61 = arith.addf %59, %60 : vector<8x128xf32>
    %62 = arith.negf %61 : vector<8x128xf32>
    %63 = math.exp %62 : vector<8x128xf32>
    %cst_28 = arith.constant 1.000000e+00 : f32
    %64 = vector.broadcast %cst_28 : f32 to vector<8x128xf32>
    %65 = arith.addf %64, %63 : vector<8x128xf32>
    %66 = arith.divf %64, %65 : vector<8x128xf32>
    %67 = vector.extract_strided_slice %57 {offsets = [0, 128], sizes = [8, 128], strides = [1, 1]} : vector<8x384xf32> to vector<8x128xf32>
    %68 = vector.extract_strided_slice %58 {offsets = [0, 128], sizes = [8, 128], strides = [1, 1]} : vector<8x384xf32> to vector<8x128xf32>
    %69 = arith.addf %67, %68 : vector<8x128xf32>
    %70 = arith.negf %69 : vector<8x128xf32>
    %71 = math.exp %70 : vector<8x128xf32>
    %cst_29 = arith.constant 1.000000e+00 : f32
    %72 = vector.broadcast %cst_29 : f32 to vector<8x128xf32>
    %73 = arith.addf %72, %71 : vector<8x128xf32>
    %74 = arith.divf %72, %73 : vector<8x128xf32>
    %75 = vector.extract_strided_slice %57 {offsets = [0, 256], sizes = [8, 128], strides = [1, 1]} : vector<8x384xf32> to vector<8x128xf32>
    %76 = vector.extract_strided_slice %58 {offsets = [0, 256], sizes = [8, 128], strides = [1, 1]} : vector<8x384xf32> to vector<8x128xf32>
    %77 = arith.addf %76, %8 : vector<8x128xf32>
    %78 = arith.mulf %66, %77 : vector<8x128xf32>
    %79 = arith.addf %75, %78 : vector<8x128xf32>
    %80 = math.tanh %79 : vector<8x128xf32>
    %81 = arith.subf %47, %80 : vector<8x128xf32>
    %82 = arith.mulf %74, %81 : vector<8x128xf32>
    %83 = arith.addf %80, %82 : vector<8x128xf32>
    %c0_30 = arith.constant 0 : index
    %84 = arith.index_cast %55 : i32 to index
    %c0_31 = arith.constant 0 : index
    %85 = vector.load %arg8[%c0_30, %84, %c0_31] : memref<1x64x128xf32, #tpu.memory_space<vmem>>, vector<1x8x128xf32>
    %86 = vector.shape_cast %85 : vector<1x8x128xf32> to vector<8x128xf32>
    %87 = vector.shape_cast %83 : vector<8x128xf32> to vector<1x8x128xf32>
    tpu.vector_store %arg8[%c0_30, %84, %c0_31], %87 {strides = array<i32>} : memref<1x64x128xf32, #tpu.memory_space<vmem>>, vector<1x8x128xf32>,
    %c2_i32 = arith.constant 2 : i32
    %c8_i32_32 = arith.constant 8 : i32
    %88 = arith.muli %c0_i32_15, %c8_i32_32 : i32
    %89 = arith.addi %88, %c2_i32 : i32
    %c8_i32_33 = arith.constant 8 : i32
    %90 = arith.muli %89, %c8_i32_33 : i32
    %91 = tpu.assume_multiple %90, 8 : i32
    %92 = arith.index_cast %91 : i32 to index
    %c0_34 = arith.constant 0 : index
    %93 = vector.load %arg9[%92, %c0_34] : memref<64x384xf32, #tpu.memory_space<vmem>>, vector<8x384xf32>
    %cst_35 = arith.constant dense<0.000000e+00> : vector<8x384xf32>
    %94 = tpu.matmul %83, %4, %cst_35 {dimension_numbers = #tpu.dot_dimension_numbers<[1], [0], [0], [1], [0, 0, 1, 1], [], []>} : vector<8x128xf32>, vector<128x384xf32>, vector<8x384xf32> -> vector<8x384xf32>
    %95 = vector.extract_strided_slice %93 {offsets = [0, 0], sizes = [8, 128], strides = [1, 1]} : vector<8x384xf32> to vector<8x128xf32>
    %96 = vector.extract_strided_slice %94 {offsets = [0, 0], sizes = [8, 128], strides = [1, 1]} : vector<8x384xf32> to vector<8x128xf32>
    %97 = arith.addf %95, %96 : vector<8x128xf32>
    %98 = arith.negf %97 : vector<8x128xf32>
    %99 = math.exp %98 : vector<8x128xf32>
    %cst_36 = arith.constant 1.000000e+00 : f32
    %100 = vector.broadcast %cst_36 : f32 to vector<8x128xf32>
    %101 = arith.addf %100, %99 : vector<8x128xf32>
    %102 = arith.divf %100, %101 : vector<8x128xf32>
    %103 = vector.extract_strided_slice %93 {offsets = [0, 128], sizes = [8, 128], strides = [1, 1]} : vector<8x384xf32> to vector<8x128xf32>
    %104 = vector.extract_strided_slice %94 {offsets = [0, 128], sizes = [8, 128], strides = [1, 1]} : vector<8x384xf32> to vector<8x128xf32>
    %105 = arith.addf %103, %104 : vector<8x128xf32>
    %106 = arith.negf %105 : vector<8x128xf32>
    %107 = math.exp %106 : vector<8x128xf32>
    %cst_37 = arith.constant 1.000000e+00 : f32
    %108 = vector.broadcast %cst_37 : f32 to vector<8x128xf32>
    %109 = arith.addf %108, %107 : vector<8x128xf32>
    %110 = arith.divf %108, %109 : vector<8x128xf32>
    %111 = vector.extract_strided_slice %93 {offsets = [0, 256], sizes = [8, 128], strides = [1, 1]} : vector<8x384xf32> to vector<8x128xf32>
    %112 = vector.extract_strided_slice %94 {offsets = [0, 256], sizes = [8, 128], strides = [1, 1]} : vector<8x384xf32> to vector<8x128xf32>
    %113 = arith.addf %112, %8 : vector<8x128xf32>
    %114 = arith.mulf %102, %113 : vector<8x128xf32>
    %115 = arith.addf %111, %114 : vector<8x128xf32>
    %116 = math.tanh %115 : vector<8x128xf32>
    %117 = arith.subf %83, %116 : vector<8x128xf32>
    %118 = arith.mulf %110, %117 : vector<8x128xf32>
    %119 = arith.addf %116, %118 : vector<8x128xf32>
    %c0_38 = arith.constant 0 : index
    %120 = arith.index_cast %91 : i32 to index
    %c0_39 = arith.constant 0 : index
    %121 = vector.load %arg8[%c0_38, %120, %c0_39] : memref<1x64x128xf32, #tpu.memory_space<vmem>>, vector<1x8x128xf32>
    %122 = vector.shape_cast %121 : vector<1x8x128xf32> to vector<8x128xf32>
    %123 = vector.shape_cast %119 : vector<8x128xf32> to vector<1x8x128xf32>
    tpu.vector_store %arg8[%c0_38, %120, %c0_39], %123 {strides = array<i32>} : memref<1x64x128xf32, #tpu.memory_space<vmem>>, vector<1x8x128xf32>,
    %c3_i32 = arith.constant 3 : i32
    %c8_i32_40 = arith.constant 8 : i32
    %124 = arith.muli %c0_i32_15, %c8_i32_40 : i32
    %125 = arith.addi %124, %c3_i32 : i32
    %c8_i32_41 = arith.constant 8 : i32
    %126 = arith.muli %125, %c8_i32_41 : i32
    %127 = tpu.assume_multiple %126, 8 : i32
    %128 = arith.index_cast %127 : i32 to index
    %c0_42 = arith.constant 0 : index
    %129 = vector.load %arg9[%128, %c0_42] : memref<64x384xf32, #tpu.memory_space<vmem>>, vector<8x384xf32>
    %cst_43 = arith.constant dense<0.000000e+00> : vector<8x384xf32>
    %130 = tpu.matmul %119, %4, %cst_43 {dimension_numbers = #tpu.dot_dimension_numbers<[1], [0], [0], [1], [0, 0, 1, 1], [], []>} : vector<8x128xf32>, vector<128x384xf32>, vector<8x384xf32> -> vector<8x384xf32>
    %131 = vector.extract_strided_slice %129 {offsets = [0, 0], sizes = [8, 128], strides = [1, 1]} : vector<8x384xf32> to vector<8x128xf32>
    %132 = vector.extract_strided_slice %130 {offsets = [0, 0], sizes = [8, 128], strides = [1, 1]} : vector<8x384xf32> to vector<8x128xf32>
    %133 = arith.addf %131, %132 : vector<8x128xf32>
    %134 = arith.negf %133 : vector<8x128xf32>
    %135 = math.exp %134 : vector<8x128xf32>
    %cst_44 = arith.constant 1.000000e+00 : f32
    %136 = vector.broadcast %cst_44 : f32 to vector<8x128xf32>
    %137 = arith.addf %136, %135 : vector<8x128xf32>
    %138 = arith.divf %136, %137 : vector<8x128xf32>
    %139 = vector.extract_strided_slice %129 {offsets = [0, 128], sizes = [8, 128], strides = [1, 1]} : vector<8x384xf32> to vector<8x128xf32>
    %140 = vector.extract_strided_slice %130 {offsets = [0, 128], sizes = [8, 128], strides = [1, 1]} : vector<8x384xf32> to vector<8x128xf32>
    %141 = arith.addf %139, %140 : vector<8x128xf32>
    %142 = arith.negf %141 : vector<8x128xf32>
    %143 = math.exp %142 : vector<8x128xf32>
    %cst_45 = arith.constant 1.000000e+00 : f32
    %144 = vector.broadcast %cst_45 : f32 to vector<8x128xf32>
    %145 = arith.addf %144, %143 : vector<8x128xf32>
    %146 = arith.divf %144, %145 : vector<8x128xf32>
    %147 = vector.extract_strided_slice %129 {offsets = [0, 256], sizes = [8, 128], strides = [1, 1]} : vector<8x384xf32> to vector<8x128xf32>
    %148 = vector.extract_strided_slice %130 {offsets = [0, 256], sizes = [8, 128], strides = [1, 1]} : vector<8x384xf32> to vector<8x128xf32>
    %149 = arith.addf %148, %8 : vector<8x128xf32>
    %150 = arith.mulf %138, %149 : vector<8x128xf32>
    %151 = arith.addf %147, %150 : vector<8x128xf32>
    %152 = math.tanh %151 : vector<8x128xf32>
    %153 = arith.subf %119, %152 : vector<8x128xf32>
    %154 = arith.mulf %146, %153 : vector<8x128xf32>
    %155 = arith.addf %152, %154 : vector<8x128xf32>
    %c0_46 = arith.constant 0 : index
    %156 = arith.index_cast %127 : i32 to index
    %c0_47 = arith.constant 0 : index
    %157 = vector.load %arg8[%c0_46, %156, %c0_47] : memref<1x64x128xf32, #tpu.memory_space<vmem>>, vector<1x8x128xf32>
    %158 = vector.shape_cast %157 : vector<1x8x128xf32> to vector<8x128xf32>
    %159 = vector.shape_cast %155 : vector<8x128xf32> to vector<1x8x128xf32>
    tpu.vector_store %arg8[%c0_46, %156, %c0_47], %159 {strides = array<i32>} : memref<1x64x128xf32, #tpu.memory_space<vmem>>, vector<1x8x128xf32>,
    %c4_i32 = arith.constant 4 : i32
    %c8_i32_48 = arith.constant 8 : i32
    %160 = arith.muli %c0_i32_15, %c8_i32_48 : i32
    %161 = arith.addi %160, %c4_i32 : i32
    %c8_i32_49 = arith.constant 8 : i32
    %162 = arith.muli %161, %c8_i32_49 : i32
    %163 = tpu.assume_multiple %162, 8 : i32
    %164 = arith.index_cast %163 : i32 to index
    %c0_50 = arith.constant 0 : index
    %165 = vector.load %arg9[%164, %c0_50] : memref<64x384xf32, #tpu.memory_space<vmem>>, vector<8x384xf32>
    %cst_51 = arith.constant dense<0.000000e+00> : vector<8x384xf32>
    %166 = tpu.matmul %155, %4, %cst_51 {dimension_numbers = #tpu.dot_dimension_numbers<[1], [0], [0], [1], [0, 0, 1, 1], [], []>} : vector<8x128xf32>, vector<128x384xf32>, vector<8x384xf32> -> vector<8x384xf32>
    %167 = vector.extract_strided_slice %165 {offsets = [0, 0], sizes = [8, 128], strides = [1, 1]} : vector<8x384xf32> to vector<8x128xf32>
    %168 = vector.extract_strided_slice %166 {offsets = [0, 0], sizes = [8, 128], strides = [1, 1]} : vector<8x384xf32> to vector<8x128xf32>
    %169 = arith.addf %167, %168 : vector<8x128xf32>
    %170 = arith.negf %169 : vector<8x128xf32>
    %171 = math.exp %170 : vector<8x128xf32>
    %cst_52 = arith.constant 1.000000e+00 : f32
    %172 = vector.broadcast %cst_52 : f32 to vector<8x128xf32>
    %173 = arith.addf %172, %171 : vector<8x128xf32>
    %174 = arith.divf %172, %173 : vector<8x128xf32>
    %175 = vector.extract_strided_slice %165 {offsets = [0, 128], sizes = [8, 128], strides = [1, 1]} : vector<8x384xf32> to vector<8x128xf32>
    %176 = vector.extract_strided_slice %166 {offsets = [0, 128], sizes = [8, 128], strides = [1, 1]} : vector<8x384xf32> to vector<8x128xf32>
    %177 = arith.addf %175, %176 : vector<8x128xf32>
    %178 = arith.negf %177 : vector<8x128xf32>
    %179 = math.exp %178 : vector<8x128xf32>
    %cst_53 = arith.constant 1.000000e+00 : f32
    %180 = vector.broadcast %cst_53 : f32 to vector<8x128xf32>
    %181 = arith.addf %180, %179 : vector<8x128xf32>
    %182 = arith.divf %180, %181 : vector<8x128xf32>
    %183 = vector.extract_strided_slice %165 {offsets = [0, 256], sizes = [8, 128], strides = [1, 1]} : vector<8x384xf32> to vector<8x128xf32>
    %184 = vector.extract_strided_slice %166 {offsets = [0, 256], sizes = [8, 128], strides = [1, 1]} : vector<8x384xf32> to vector<8x128xf32>
    %185 = arith.addf %184, %8 : vector<8x128xf32>
    %186 = arith.mulf %174, %185 : vector<8x128xf32>
    %187 = arith.addf %183, %186 : vector<8x128xf32>
    %188 = math.tanh %187 : vector<8x128xf32>
    %189 = arith.subf %155, %188 : vector<8x128xf32>
    %190 = arith.mulf %182, %189 : vector<8x128xf32>
    %191 = arith.addf %188, %190 : vector<8x128xf32>
    %c0_54 = arith.constant 0 : index
    %192 = arith.index_cast %163 : i32 to index
    %c0_55 = arith.constant 0 : index
    %193 = vector.load %arg8[%c0_54, %192, %c0_55] : memref<1x64x128xf32, #tpu.memory_space<vmem>>, vector<1x8x128xf32>
    %194 = vector.shape_cast %193 : vector<1x8x128xf32> to vector<8x128xf32>
    %195 = vector.shape_cast %191 : vector<8x128xf32> to vector<1x8x128xf32>
    tpu.vector_store %arg8[%c0_54, %192, %c0_55], %195 {strides = array<i32>} : memref<1x64x128xf32, #tpu.memory_space<vmem>>, vector<1x8x128xf32>,
    %c5_i32 = arith.constant 5 : i32
    %c8_i32_56 = arith.constant 8 : i32
    %196 = arith.muli %c0_i32_15, %c8_i32_56 : i32
    %197 = arith.addi %196, %c5_i32 : i32
    %c8_i32_57 = arith.constant 8 : i32
    %198 = arith.muli %197, %c8_i32_57 : i32
    %199 = tpu.assume_multiple %198, 8 : i32
    %200 = arith.index_cast %199 : i32 to index
    %c0_58 = arith.constant 0 : index
    %201 = vector.load %arg9[%200, %c0_58] : memref<64x384xf32, #tpu.memory_space<vmem>>, vector<8x384xf32>
    %cst_59 = arith.constant dense<0.000000e+00> : vector<8x384xf32>
    %202 = tpu.matmul %191, %4, %cst_59 {dimension_numbers = #tpu.dot_dimension_numbers<[1], [0], [0], [1], [0, 0, 1, 1], [], []>} : vector<8x128xf32>, vector<128x384xf32>, vector<8x384xf32> -> vector<8x384xf32>
    %203 = vector.extract_strided_slice %201 {offsets = [0, 0], sizes = [8, 128], strides = [1, 1]} : vector<8x384xf32> to vector<8x128xf32>
    %204 = vector.extract_strided_slice %202 {offsets = [0, 0], sizes = [8, 128], strides = [1, 1]} : vector<8x384xf32> to vector<8x128xf32>
    %205 = arith.addf %203, %204 : vector<8x128xf32>
    %206 = arith.negf %205 : vector<8x128xf32>
    %207 = math.exp %206 : vector<8x128xf32>
    %cst_60 = arith.constant 1.000000e+00 : f32
    %208 = vector.broadcast %cst_60 : f32 to vector<8x128xf32>
    %209 = arith.addf %208, %207 : vector<8x128xf32>
    %210 = arith.divf %208, %209 : vector<8x128xf32>
    %211 = vector.extract_strided_slice %201 {offsets = [0, 128], sizes = [8, 128], strides = [1, 1]} : vector<8x384xf32> to vector<8x128xf32>
    %212 = vector.extract_strided_slice %202 {offsets = [0, 128], sizes = [8, 128], strides = [1, 1]} : vector<8x384xf32> to vector<8x128xf32>
    %213 = arith.addf %211, %212 : vector<8x128xf32>
    %214 = arith.negf %213 : vector<8x128xf32>
    %215 = math.exp %214 : vector<8x128xf32>
    %cst_61 = arith.constant 1.000000e+00 : f32
    %216 = vector.broadcast %cst_61 : f32 to vector<8x128xf32>
    %217 = arith.addf %216, %215 : vector<8x128xf32>
    %218 = arith.divf %216, %217 : vector<8x128xf32>
    %219 = vector.extract_strided_slice %201 {offsets = [0, 256], sizes = [8, 128], strides = [1, 1]} : vector<8x384xf32> to vector<8x128xf32>
    %220 = vector.extract_strided_slice %202 {offsets = [0, 256], sizes = [8, 128], strides = [1, 1]} : vector<8x384xf32> to vector<8x128xf32>
    %221 = arith.addf %220, %8 : vector<8x128xf32>
    %222 = arith.mulf %210, %221 : vector<8x128xf32>
    %223 = arith.addf %219, %222 : vector<8x128xf32>
    %224 = math.tanh %223 : vector<8x128xf32>
    %225 = arith.subf %191, %224 : vector<8x128xf32>
    %226 = arith.mulf %218, %225 : vector<8x128xf32>
    %227 = arith.addf %224, %226 : vector<8x128xf32>
    %c0_62 = arith.constant 0 : index
    %228 = arith.index_cast %199 : i32 to index
    %c0_63 = arith.constant 0 : index
    %229 = vector.load %arg8[%c0_62, %228, %c0_63] : memref<1x64x128xf32, #tpu.memory_space<vmem>>, vector<1x8x128xf32>
    %230 = vector.shape_cast %229 : vector<1x8x128xf32> to vector<8x128xf32>
    %231 = vector.shape_cast %227 : vector<8x128xf32> to vector<1x8x128xf32>
    tpu.vector_store %arg8[%c0_62, %228, %c0_63], %231 {strides = array<i32>} : memref<1x64x128xf32, #tpu.memory_space<vmem>>, vector<1x8x128xf32>,
    %c6_i32 = arith.constant 6 : i32
    %c8_i32_64 = arith.constant 8 : i32
    %232 = arith.muli %c0_i32_15, %c8_i32_64 : i32
    %233 = arith.addi %232, %c6_i32 : i32
    %c8_i32_65 = arith.constant 8 : i32
    %234 = arith.muli %233, %c8_i32_65 : i32
    %235 = tpu.assume_multiple %234, 8 : i32
    %236 = arith.index_cast %235 : i32 to index
    %c0_66 = arith.constant 0 : index
    %237 = vector.load %arg9[%236, %c0_66] : memref<64x384xf32, #tpu.memory_space<vmem>>, vector<8x384xf32>
    %cst_67 = arith.constant dense<0.000000e+00> : vector<8x384xf32>
    %238 = tpu.matmul %227, %4, %cst_67 {dimension_numbers = #tpu.dot_dimension_numbers<[1], [0], [0], [1], [0, 0, 1, 1], [], []>} : vector<8x128xf32>, vector<128x384xf32>, vector<8x384xf32> -> vector<8x384xf32>
    %239 = vector.extract_strided_slice %237 {offsets = [0, 0], sizes = [8, 128], strides = [1, 1]} : vector<8x384xf32> to vector<8x128xf32>
    %240 = vector.extract_strided_slice %238 {offsets = [0, 0], sizes = [8, 128], strides = [1, 1]} : vector<8x384xf32> to vector<8x128xf32>
    %241 = arith.addf %239, %240 : vector<8x128xf32>
    %242 = arith.negf %241 : vector<8x128xf32>
    %243 = math.exp %242 : vector<8x128xf32>
    %cst_68 = arith.constant 1.000000e+00 : f32
    %244 = vector.broadcast %cst_68 : f32 to vector<8x128xf32>
    %245 = arith.addf %244, %243 : vector<8x128xf32>
    %246 = arith.divf %244, %245 : vector<8x128xf32>
    %247 = vector.extract_strided_slice %237 {offsets = [0, 128], sizes = [8, 128], strides = [1, 1]} : vector<8x384xf32> to vector<8x128xf32>
    %248 = vector.extract_strided_slice %238 {offsets = [0, 128], sizes = [8, 128], strides = [1, 1]} : vector<8x384xf32> to vector<8x128xf32>
    %249 = arith.addf %247, %248 : vector<8x128xf32>
    %250 = arith.negf %249 : vector<8x128xf32>
    %251 = math.exp %250 : vector<8x128xf32>
    %cst_69 = arith.constant 1.000000e+00 : f32
    %252 = vector.broadcast %cst_69 : f32 to vector<8x128xf32>
    %253 = arith.addf %252, %251 : vector<8x128xf32>
    %254 = arith.divf %252, %253 : vector<8x128xf32>
    %255 = vector.extract_strided_slice %237 {offsets = [0, 256], sizes = [8, 128], strides = [1, 1]} : vector<8x384xf32> to vector<8x128xf32>
    %256 = vector.extract_strided_slice %238 {offsets = [0, 256], sizes = [8, 128], strides = [1, 1]} : vector<8x384xf32> to vector<8x128xf32>
    %257 = arith.addf %256, %8 : vector<8x128xf32>
    %258 = arith.mulf %246, %257 : vector<8x128xf32>
    %259 = arith.addf %255, %258 : vector<8x128xf32>
    %260 = math.tanh %259 : vector<8x128xf32>
    %261 = arith.subf %227, %260 : vector<8x128xf32>
    %262 = arith.mulf %254, %261 : vector<8x128xf32>
    %263 = arith.addf %260, %262 : vector<8x128xf32>
    %c0_70 = arith.constant 0 : index
    %264 = arith.index_cast %235 : i32 to index
    %c0_71 = arith.constant 0 : index
    %265 = vector.load %arg8[%c0_70, %264, %c0_71] : memref<1x64x128xf32, #tpu.memory_space<vmem>>, vector<1x8x128xf32>
    %266 = vector.shape_cast %265 : vector<1x8x128xf32> to vector<8x128xf32>
    %267 = vector.shape_cast %263 : vector<8x128xf32> to vector<1x8x128xf32>
    tpu.vector_store %arg8[%c0_70, %264, %c0_71], %267 {strides = array<i32>} : memref<1x64x128xf32, #tpu.memory_space<vmem>>, vector<1x8x128xf32>,
    %c7_i32 = arith.constant 7 : i32
    %c8_i32_72 = arith.constant 8 : i32
    %268 = arith.muli %c0_i32_15, %c8_i32_72 : i32
    %269 = arith.addi %268, %c7_i32 : i32
    %c8_i32_73 = arith.constant 8 : i32
    %270 = arith.muli %269, %c8_i32_73 : i32
    %271 = tpu.assume_multiple %270, 8 : i32
    %272 = arith.index_cast %271 : i32 to index
    %c0_74 = arith.constant 0 : index
    %273 = vector.load %arg9[%272, %c0_74] : memref<64x384xf32, #tpu.memory_space<vmem>>, vector<8x384xf32>
    %cst_75 = arith.constant dense<0.000000e+00> : vector<8x384xf32>
    %274 = tpu.matmul %263, %4, %cst_75 {dimension_numbers = #tpu.dot_dimension_numbers<[1], [0], [0], [1], [0, 0, 1, 1], [], []>} : vector<8x128xf32>, vector<128x384xf32>, vector<8x384xf32> -> vector<8x384xf32>
    %275 = vector.extract_strided_slice %273 {offsets = [0, 0], sizes = [8, 128], strides = [1, 1]} : vector<8x384xf32> to vector<8x128xf32>
    %276 = vector.extract_strided_slice %274 {offsets = [0, 0], sizes = [8, 128], strides = [1, 1]} : vector<8x384xf32> to vector<8x128xf32>
    %277 = arith.addf %275, %276 : vector<8x128xf32>
    %278 = arith.negf %277 : vector<8x128xf32>
    %279 = math.exp %278 : vector<8x128xf32>
    %cst_76 = arith.constant 1.000000e+00 : f32
    %280 = vector.broadcast %cst_76 : f32 to vector<8x128xf32>
    %281 = arith.addf %280, %279 : vector<8x128xf32>
    %282 = arith.divf %280, %281 : vector<8x128xf32>
    %283 = vector.extract_strided_slice %273 {offsets = [0, 128], sizes = [8, 128], strides = [1, 1]} : vector<8x384xf32> to vector<8x128xf32>
    %284 = vector.extract_strided_slice %274 {offsets = [0, 128], sizes = [8, 128], strides = [1, 1]} : vector<8x384xf32> to vector<8x128xf32>
    %285 = arith.addf %283, %284 : vector<8x128xf32>
    %286 = arith.negf %285 : vector<8x128xf32>
    %287 = math.exp %286 : vector<8x128xf32>
    %cst_77 = arith.constant 1.000000e+00 : f32
    %288 = vector.broadcast %cst_77 : f32 to vector<8x128xf32>
    %289 = arith.addf %288, %287 : vector<8x128xf32>
    %290 = arith.divf %288, %289 : vector<8x128xf32>
    %291 = vector.extract_strided_slice %273 {offsets = [0, 256], sizes = [8, 128], strides = [1, 1]} : vector<8x384xf32> to vector<8x128xf32>
    %292 = vector.extract_strided_slice %274 {offsets = [0, 256], sizes = [8, 128], strides = [1, 1]} : vector<8x384xf32> to vector<8x128xf32>
    %293 = arith.addf %292, %8 : vector<8x128xf32>
    %294 = arith.mulf %282, %293 : vector<8x128xf32>
    %295 = arith.addf %291, %294 : vector<8x128xf32>
    %296 = math.tanh %295 : vector<8x128xf32>
    %297 = arith.subf %263, %296 : vector<8x128xf32>
    %298 = arith.mulf %290, %297 : vector<8x128xf32>
    %299 = arith.addf %296, %298 : vector<8x128xf32>
    %c0_78 = arith.constant 0 : index
    %300 = arith.index_cast %271 : i32 to index
    %c0_79 = arith.constant 0 : index
    %301 = vector.load %arg8[%c0_78, %300, %c0_79] : memref<1x64x128xf32, #tpu.memory_space<vmem>>, vector<1x8x128xf32>
    %302 = vector.shape_cast %301 : vector<1x8x128xf32> to vector<8x128xf32>
    %303 = vector.shape_cast %299 : vector<8x128xf32> to vector<1x8x128xf32>
    tpu.vector_store %arg8[%c0_78, %300, %c0_79], %303 {strides = array<i32>} : memref<1x64x128xf32, #tpu.memory_space<vmem>>, vector<1x8x128xf32>,
    %c8_i32_80 = arith.constant 8 : i32
    %c1_i32_81 = arith.constant 1 : i32
    %c0_82 = arith.constant 0 : index
    %c0_83 = arith.constant 0 : index
    %304 = vector.load %arg10[%c0_82, %c0_83] : memref<8x128xf32, #tpu.memory_space<vmem>>, vector<8x128xf32>
    tpu.vector_store %arg10[%c0_82, %c0_83], %299 {strides = array<i32>} : memref<8x128xf32, #tpu.memory_space<vmem>>, vector<8x128xf32>,
    return
  }
  func.func @transform_0(%arg0: i32, %arg1: i32) -> (i32, i32, i32) {
    %c0_i32 = arith.constant 0 : i32
    %c0_i32_0 = arith.constant 0 : i32
    return %arg0, %arg1, %c0_i32 : i32, i32, i32
  }
  func.func @transform_1(%arg0: i32, %arg1: i32) -> (i32, i32) {
    %c0_i32 = arith.constant 0 : i32
    %c0_i32_0 = arith.constant 0 : i32
    return %arg0, %c0_i32 : i32, i32
  }
  func.func @transform_2(%arg0: i32, %arg1: i32) -> (i32, i32) {
    %c0_i32 = arith.constant 0 : i32
    %c0_i32_0 = arith.constant 0 : i32
    %c0_i32_1 = arith.constant 0 : i32
    return %c0_i32, %c0_i32_0 : i32, i32
  }
  func.func @transform_3(%arg0: i32, %arg1: i32) -> (i32, i32) {
    %c0_i32 = arith.constant 0 : i32
    %c0_i32_0 = arith.constant 0 : i32
    %c0_i32_1 = arith.constant 0 : i32
    return %c0_i32, %c0_i32_0 : i32, i32
  }
  func.func @transform_4(%arg0: i32, %arg1: i32) -> (i32, i32) {
    %c0_i32 = arith.constant 0 : i32
    %c0_i32_0 = arith.constant 0 : i32
    %c0_i32_1 = arith.constant 0 : i32
    return %c0_i32, %c0_i32_0 : i32, i32
  }
  func.func @transform_5(%arg0: i32, %arg1: i32) -> (i32, i32) {
    %c0_i32 = arith.constant 0 : i32
    %c0_i32_0 = arith.constant 0 : i32
    %c0_i32_1 = arith.constant 0 : i32
    return %c0_i32, %c0_i32_0 : i32, i32
  }
  func.func @transform_6(%arg0: i32, %arg1: i32) -> (i32, i32, i32) {
    %c0_i32 = arith.constant 0 : i32
    %c0_i32_0 = arith.constant 0 : i32
    return %arg0, %arg1, %c0_i32 : i32, i32, i32
  }
}

</mosaic_0001>

<bundles_post_ra>
// kernel: tpu_custom_call.1
= control target key start
LH: loop header
LB: loop body
LE: loop exit
PB: predicated region body
PF: predicated region fallthrough
CT: control target
= control target key end

     0   :  { %11 = vsyncpa [#allocation5], 0  ;;  %s3439_s0 = inlined_call_operand.vmem [shape: f32[1,64,16], index: 0, kind: input, shape index: {}]   ;;  %s3440_s1 = inlined_call_operand.vmem [shape: f32[8,128], index: 1, kind: input, shape index: {}]   ;;  %s3441_s2 = inlined_call_operand.vmem [shape: f32[16,384], index: 2, kind: input, shape index: {}]   ;;  %s3442_s3 = inlined_call_operand.hbm [shape: f32[128,384], index: 3, kind: input, shape index: {}]   ;;  %s3443_s4 = inlined_call_operand.vmem [shape: f32[1,384], index: 4, kind: input, shape index: {}]   ;;  %s3444_s5 = inlined_call_operand.vmem [shape: f32[1,128], index: 5, kind: input, shape index: {}]   ;;  %s3445_s6 = inlined_call_operand.hbm [shape: f32[1,64,128], index: 6, kind: output, shape index: {}]  }
   0x1   :  { %12 = vsyncpa [#allocation6], 0  ;;  %s2882_s21 = smov [#allocation4]   ;;  %s2834_s25 = scalar_lea.hbm %s3442_s3, 6144 }
   0x2   :  { %s24_s22 = sshll.u32 %s2882_s21, 4  ;;  %p2835_p0 = scmp.ne.s32.totalorder %s3442_s3, %s2834_s25  ;;  %s25_s22 = int_to_ptr.vmem [resolvable:$true] %s24_s22 }
   0x3   :  { %p2838_p1 = scmp.lt.u32.totalorder %s2834_s25, %s3442_s3 }
   0x5   :  { %p2840_p2 = pnand %p2838_p1, %p2835_p0 }
   0x7   :  { %2843 = shalt.err (!%p2840_p2)
}
   0x8   :  { %s2844_s30 = scalar_lea.vmem %s25_s22, 6144  ;;  %p2849_p4 = scmp.lt.s32.totalorder %s25_s22, %s25_s22 }
   0x9   :  { %p2845_p3 = scmp.ne.s32.totalorder %s25_s22, %s2844_s30  ;;  %p2850_p5 = scmp.lt.s32.totalorder %s2844_s30, %s2844_s30 }
   0xb   :  { %p2851_p6 = por %p2850_p5, %p2849_p4 }
   0xd   :  { %p2852_p7 = pnand %p2851_p6, %p2845_p3 }
   0xf   :  { %2855 = shalt.err (!%p2852_p7)
}
  0x10   :  { %s2883_s7 = smov 384   ;;  %s2884_s8 = smov 24  }
  0x11   :  { %30 = dma.hbm_to_vmem [thread:$0]  %s3442_s3, 6144, %s25_s22, [#allocation5], %s2883_s7, %s2883_s7, %s2884_s8  }
  0x12   :  { %2878 = dma.done.wait [#allocation5], 6144  }
  0x13   :  { %2879 = vsyncadd [#allocation5], 4294961152  ;;  %v2885_v0 = vmov 0.0   ;;  %v45_v1 = vld [vmem:[%s3441_s2 + $0x8] sm:$0xff]  ;;  %v48_v2 = vld [vmem:[%s3441_s2 + $0x20] sm:$0xff]  ;;  %vm130_vm0 = vcmask 130048  }
  0x14   :  { %219 = vmatprep.mubr.f32.mxu0 %v2885_v0  ;;  %v44_v3 = vld [vmem:[%s3441_s2] sm:$0xff]  ;;  %v2257_v4 = vpack.c.bf16 %v48_v2, %v45_v1  ;;  %v47_v5 = vld [vmem:[%s3441_s2 + $0x18] sm:$0xff]  ;;  %v54_v9 = vld [vmem:[#allocation4 + $0x20] sm:$0xff]  ;;  %v2886_v48 = vmov 0.0|0.0   ;;  %vm2887_vm1 = vmmov 0  }
  0x15   :  { %v106_v6 = vld [vmem:[%s3439_s0] sm:$0xff]  ;;  %v51_v7 = vld [vmem:[#allocation4 + $0x8] sm:$0xff]  ;;  %v2259_v8 = vpack.c.bf16 %v47_v5, %v44_v3  ;;  %v50_v10 = vld [vmem:[#allocation4] sm:$0xff] }
  0x16   :  { %v53_v11 = vld [vmem:[#allocation4 + $0x18] sm:$0xff]  ;;  %1965 = vmatprep.mubr.msk.f32.mxu1 %vm130_vm0, %v106_v6  ;;  %2258 = vmatprep.subr.bf16.mxu0 %v2257_v4  ;;  %v2955_v12 = vpack.c.bf16 %v54_v9, %v51_v7  ;;  %v60_v14 = vld [vmem:[#allocation4 + $0x50] sm:$0xff]  ;;  %v59_v18 = vld [vmem:[#allocation4 + $0x48] sm:$0xff] }
  0x17   :  { %v57_v13 = vld [vmem:[#allocation4 + $0x38] sm:$0xff]  ;;  %2260 = vmatpush1.bf16.msra.mxu0 %v2259_v8  ;;  %v2957_v15 = vpack.c.bf16 %v53_v11, %v50_v10  ;;  %v56_v17 = vld [vmem:[#allocation4 + $0x30] sm:$0xff]  ;;  %v63_v19 = vld [vmem:[#allocation4 + $0x68] sm:$0xff] }
  0x18   :  { %2266 = vmatprep.subr.bf16.mxu0 %v2955_v12  ;;  %v2960_v16 = vpack.c.bf16 %v60_v14, %v57_v13  ;;  %v66_v20 = vld [vmem:[#allocation4 + $0x80] sm:$0xff]  ;;  %v107_v21 = vld [vmem:[%s3439_s0 + $0x8] sm:$0xff]  ;;  %v2968_v22 = vpack.c.bf16 %v59_v18, %v56_v17  ;;  %v72_v27 = vld [vmem:[#allocation4 + $0xb0] sm:$0xff] }
  0x19   :  { %v2971_v23 = vpack.c.bf16 %v66_v20, %v63_v19  ;;  %v62_v24 = vld [vmem:[#allocation4 + $0x60] sm:$0xff]  ;;  %v65_v25 = vld [vmem:[#allocation4 + $0x78] sm:$0xff]  ;;  %v68_v34 = vld [vmem:[#allocation4 + $0x90] sm:$0xff] }
  0x1a   :  { %1783 = vmatmul.mubr.msk.f32.vlgmr.msra.gmra.mrb[0].mxu0 %vm130_vm0, %v106_v6  ;;  %v69_v26 = vld [vmem:[#allocation4 + $0x98] sm:$0xff]  ;;  %v46_v28 = vld [vmem:[%s3441_s2 + $0x10] sm:$0xff]  ;;  %v2985_v31 = vpack.c.bf16 %v65_v25, %v62_v24  ;;  %v71_v35 = vld [vmem:[#allocation4 + $0xa8] sm:$0xff] }
  0x1b   :  { %2268 = vmatpush1.bf16.msra.mxu0 %v2957_v15  ;;  %225 = vmatprep.mubr.f32.mxu0 %v2885_v0  ;;  %v49_v29 = vld [vmem:[%s3441_s2 + $0x28] sm:$0xff]  ;;  %v108_v30 = vld [vmem:[%s3439_s0 + $0x10] sm:$0xff]  ;;  %v2988_v33 = vpack.c.bf16 %v72_v27, %v69_v26  ;;  %v52_v36 = vld [vmem:[#allocation4 + $0x10] sm:$0xff]  ;;  %v2998_v42 = vpack.c.bf16 %v71_v35, %v68_v34 }
  0x1c   :  { %2270 = vmatprep.subr.bf16.mxu0 %v2960_v16  ;;  %v2261_v32 = vpack.c.bf16 %v49_v29, %v46_v28  ;;  %v75_v37 = vld [vmem:[#allocation4 + $0xc8] sm:$0xff]  ;;  %v78_v38 = vld [vmem:[#allocation4 + $0xe0] sm:$0xff]  ;;  %v61_v44 = vld [vmem:[#allocation4 + $0x58] sm:$0xff] }
  0x1d   :  { %v55_v39 = vld [vmem:[#allocation4 + $0x28] sm:$0xff]  ;;  %v58_v43 = vld [vmem:[#allocation4 + $0x40] sm:$0xff]  ;;  %v3001_v45 = vpack.c.bf16 %v78_v38, %v75_v37  ;;  %v77_v47 = vld [vmem:[#allocation4 + $0xd8] sm:$0xff] }
  0x1e   :  { %1784 = vmatmul.mubr.msk.f32.gmra.mrb[2].mxu0 %vm130_vm0, %v107_v21  ;;  %2262 = vmatprep.subr.bf16.mxu1 %v2261_v32  ;;  %v2991_v40 = vpack.c.bf16 %v55_v39, %v52_v36  ;;  %v109_v41 = vld [vmem:[%s3439_s0 + $0x18] sm:$0xff]  ;;  %v74_v46 = vld [vmem:[#allocation4 + $0xc0] sm:$0xff]  ;;  %v81_v49 = vld [vmem:[#allocation4 + $0xf8] sm:$0xff]  ;;  %v3007_v51 = vpack.c.bf16 %v61_v44, %v58_v43  ;;  %v115_v36 = vlaneseq }
  0x1f   :  { %2272 = vmatpush1.bf16.msra.mxu0 %v2968_v22  ;;  %231 = vmatprep.mubr.f32.mxu0 %v2885_v0  ;;  %v84_v50 = vld [vmem:[#allocation4 + $0x110] sm:$0xff]  ;;  %v3014_v53 = vpack.c.bf16 %v77_v47, %v74_v46  ;;  %v67_v55 = vld [vmem:[#allocation4 + $0x88] sm:$0xff]  ;;  %v90_v60 = vld [vmem:[#allocation4 + $0x140] sm:$0xff] }
  0x20   :  { %2274 = vmatprep.subr.bf16.mxu0 %v2971_v23  ;;  %2264 = vmatpush3.bf16.msra.mxu1 %v2261_v32  ;;  %v110_v52 = vld [vmem:[%s3439_s0 + $0x20] sm:$0xff]  ;;  %v3017_v56 = vpack.c.bf16 %v84_v50, %v81_v49  ;;  %v83_v58 = vld [vmem:[#allocation4 + $0x108] sm:$0xff]  ;;  %v111_v62 = vld [vmem:[%s3439_s0 + $0x28] sm:$0xff]  ;;  %v116_v37 = vshrl.u32 %v115_v36, 7 }
  0x21   :  { %2297 = vmatprep.subr.bf16.mxu1 %v2886_v48  ;;  %v64_v54 = vld [vmem:[#allocation4 + $0x70] sm:$0xff]  ;;  %v87_v59 = vld [vmem:[#allocation4 + $0x128] sm:$0xff]  ;;  %v70_v1 = vld [vmem:[#allocation4 + $0xa0] sm:$0xff] }
  0x22   :  { %1785 = vmatmul.mubr.msk.f32.gmra.mrb[4].mxu0 %vm130_vm0, %v108_v30  ;;  %v80_v57 = vld [vmem:[#allocation4 + $0xf0] sm:$0xff]  ;;  %v3023_v61 = vpack.c.bf16 %v67_v55, %v64_v54  ;;  %v73_v2 = vld [vmem:[#allocation4 + $0xb8] sm:$0xff]  ;;  %v3033_v3 = vpack.c.bf16 %v90_v60, %v87_v59  ;;  %v86_v4 = vld [vmem:[#allocation4 + $0x120] sm:$0xff]  ;;  %v125_v38 = vsub.s32 2, %v116_v37  ;;  %v117_v54 = vsub.s32 0, %v116_v37 }
  0x23   :  { %2276 = vmatpush1.bf16.msra.mxu0 %v2985_v31  ;;  %237 = vmatprep.mubr.f32.mxu0 %v2885_v0  ;;  %v3030_v63 = vpack.c.bf16 %v83_v58, %v80_v57  ;;  %v89_v5 = vld [vmem:[#allocation4 + $0x138] sm:$0xff]  ;;  %v96_v7 = vld [vmem:[#allocation4 + $0x170] sm:$0xff]  ;;  %v3039_v8 = vpack.c.bf16 %v73_v2, %v70_v1  ;;  %v112_v9 = vld [vmem:[%s3439_s0 + $0x30] sm:$0xff] }
  0x24   :  { %2278 = vmatprep.subr.bf16.mxu0 %v2988_v33  ;;  %1966 = vmatmul.mubr.msk.f32.vlgmr.msra.gmra.mrb[0].mxu1 %vm130_vm0, %v107_v21  ;;  %v93_v6 = vld [vmem:[#allocation4 + $0x158] sm:$0xff]  ;;  %v3046_v10 = vpack.c.bf16 %v89_v5, %v86_v4  ;;  %v76_v11 = vld [vmem:[#allocation4 + $0xd0] sm:$0xff]  ;;  %v79_v13 = vld [vmem:[#allocation4 + $0xe8] sm:$0xff] }
  0x25   :  { %2299 = vmatpush3.bf16.msra.mxu1 %v2991_v40  ;;  %1968 = vmatprep.mubr.msk.f32.mxu1 %vm130_vm0, %v108_v30  ;;  %v3049_v14 = vpack.c.bf16 %v96_v7, %v93_v6  ;;  %v92_v17 = vld [vmem:[#allocation4 + $0x150] sm:$0xff]  ;;  %v95_v18 = vld [vmem:[#allocation4 + $0x168] sm:$0xff]  ;;  %v3055_v19 = vpack.c.bf16 %v79_v13, %v76_v11  ;;  %v82_v24 = vld [vmem:[#allocation4 + $0x100] sm:$0xff]  ;;  %v121_v6 = vsub.s32 1, %v116_v37 }
  0x26   :  { %1786 = vmatmul.mubr.msk.f32.gmra.mrb[6].mxu0 %vm130_vm0, %v109_v41  ;;  %2300 = vmatprep.subr.bf16.mxu1 %v2886_v48  ;;  %v113_v20 = vld [vmem:[%s3439_s0 + $0x38] sm:$0xff]  ;;  %v3062_v21 = vpack.c.bf16 %v95_v18, %v92_v17  ;;  %v85_v25 = vld [vmem:[#allocation4 + $0x118] sm:$0xff]  ;;  %v3076_v27 = vld [vmem:[%s3440_s1] sm:$0xff] }
  0x27   :  { %2280 = vmatpush1.bf16.msra.mxu0 %v2998_v42  ;;  %243 = vmatprep.mubr.f32.mxu0 %v2885_v0  ;;  %v3069_v26 = vpack.c.bf16 %v85_v25, %v82_v24  ;;  %v88_v28 = vld [vmem:[#allocation4 + $0x130] sm:$0xff]  ;;  %v91_v29 = vld [vmem:[#allocation4 + $0x148] sm:$0xff]  ;;  %v94_v32 = vld [vmem:[#allocation4 + $0x160] sm:$0xff] }
  0x28   :  { %2282 = vmatprep.subr.bf16.mxu0 %v3001_v45  ;;  %1969 = vmatmul.mubr.msk.f32.gmra.mrb[2].mxu1 %vm130_vm0, %v109_v41  ;;  %v3084_v30 = vpack.c.bf16 %v91_v29, %v88_v28  ;;  %v97_v34 = vld [vmem:[#allocation4 + $0x178] sm:$0xff]  ;;  %v98_v39 = vld [vmem:[%s3443_s4] sm:$0x7] }
  0x29   :  { %2302 = vmatpush3.bf16.msra.mxu1 %v3007_v51  ;;  %1971 = vmatprep.mubr.msk.f32.mxu1 %vm130_vm0, %v110_v52  ;;  %v3093_v35 = vpack.c.bf16 %v97_v34, %v94_v32  ;;  %v126_v41 = vrot.slane %v98_v39, %v125_v38  ;;  %v3142_v59 = vrot.slane %v98_v39, %v117_v54  ;;  %v3157_v29 = vld [vmem:[%s3444_s5] ss:$0 sm:$0xff]  ;;  %s2888_s5 = smov [#allocation7]  }
  0x2a   :  { %1787 = vmatmul.mubr.msk.f32.gmra.mrb[8].mxu0 %vm130_vm0, %v110_v52  ;;  %2303 = vmatprep.subr.bf16.mxu1 %v2886_v48  ;;  %v3151_v13 = vrot.slane %v98_v39, %v121_v6  ;;  %s1763_s16 = sshll.u32 %s2888_s5, 4  ;;  %s1764_s16 = int_to_ptr.vmem [resolvable:$true] %s1763_s16 }
  0x2b   :  { %2284 = vmatpush1.bf16.msra.mxu0 %v3014_v53  ;;  %249 = vmatprep.mubr.f32.mxu0 %v2885_v0  ;;  %s2856_s17 = scalar_lea.vmem %s1764_s16, 1024  ;;  %p2861_p9 = scmp.lt.s32.totalorder %s1764_s16, %s1764_s16 }
  0x2c   :  { %2286 = vmatprep.subr.bf16.mxu0 %v3017_v56  ;;  %1972 = vmatmul.mubr.msk.f32.gmra.mrb[4].mxu1 %vm130_vm0, %v111_v62  ;;  %p2857_p8 = scmp.ne.s32.totalorder %s1764_s16, %s2856_s17  ;;  %p2862_p10 = scmp.lt.s32.totalorder %s2856_s17, %s2856_s17 }
  0x2d   :  { %2305 = vmatpush3.bf16.msra.mxu1 %v3023_v61  ;;  %1974 = vmatprep.mubr.msk.f32.mxu1 %vm130_vm0, %v112_v9 }
  0x2e   :  { %1788 = vmatmul.mubr.msk.f32.gmra.mrb[10].mxu0 %vm130_vm0, %v111_v62  ;;  %2306 = vmatprep.subr.bf16.mxu1 %v2886_v48  ;;  %p2863_p11 = por %p2862_p10, %p2861_p9 }
  0x2f   :  { %2288 = vmatpush1.bf16.msra.mxu0 %v3030_v63  ;;  %255 = vmatprep.mubr.f32.mxu0 %v2885_v0 }
  0x30   :  { %2290 = vmatprep.subr.bf16.mxu0 %v3033_v3  ;;  %1975 = vmatmul.mubr.msk.f32.gmra.mrb[6].mxu1 %vm130_vm0, %v113_v20  ;;  %p2864_p12 = pnand %p2863_p11, %p2857_p8 }
  0x31   :  { %2308 = vmatpush3.bf16.msra.mxu1 %v3039_v8  ;;  %2009 = vmatprep.mubr.msk.f32.mxu1 %vm2887_vm1, %v2885_v0 }
  0x32   :  { %1789 = vmatmul.mubr.msk.f32.gmra.mrb[12].mxu0 %vm130_vm0, %v112_v9  ;;  %2309 = vmatprep.subr.bf16.mxu1 %v2886_v48 }
  0x33   :  { %2292 = vmatpush1.bf16.msra.mxu0 %v3046_v10  ;;  %261 = vmatprep.mubr.f32.mxu0 %v2885_v0 }
  0x34   :  { %2294 = vmatprep.subr.bf16.mxu0 %v3049_v14 }
  0x35   :  { %2311 = vmatpush3.bf16.msra.mxu1 %v3055_v19 }
  0x36   :  { %1790 = vmatmul.mubr.msk.f32.gmra.mrb[14].mxu0 %vm130_vm0, %v113_v20  ;;  %2312 = vmatprep.subr.bf16.mxu1 %v2886_v48 }
  0x37   :  { %2296 = vmatpush1.bf16.msra.mxu0 %v3062_v21  ;;  %468 = vmatprep.mubr.f32.mxu0 %v2885_v0 }
  0x38   :  { %2322 = vmatprep.subr.bf16.mxu0 %v2955_v12 }
  0x39   :  { %2314 = vmatpush3.bf16.msra.mxu1 %v3069_v26 }
  0x3a   :  { %469 = vmatmul.mubr.f32.vlgmr.msra.gmra.mrb[0].mxu0 %v3076_v27  ;;  %2315 = vmatprep.subr.bf16.mxu1 %v2886_v48 }
  0x3b   :  { %2324 = vmatpush1.bf16.msra.mxu0 %v2957_v15  ;;  %637 = vmatprep.mubr.f32.mxu0 %v2885_v0 }
  0x3c   :  { %2326 = vmatprep.subr.bf16.mxu0 %v2960_v16 }
  0x3d   :  { %2317 = vmatpush3.bf16.msra.mxu1 %v3084_v30 }
  0x3e   :  { %2318 = vmatprep.subr.bf16.mxu1 %v2886_v48 }
  0x3f   :  { %2328 = vmatpush1.bf16.msra.mxu0 %v2968_v22 }
  0x40   :  { %2330 = vmatprep.subr.bf16.mxu0 %v2971_v23 }
  0x41   :  { %2320 = vmatpush3.bf16.msra.mxu1 %v3093_v35 }
  0x42   :  { %2353 = vmatprep.subr.bf16.mxu1 %v2886_v48 }
  0x43   :  { %2332 = vmatpush1.bf16.msra.mxu0 %v2985_v31 }
  0x44   :  { %2010 = vmatmul.mubr.f32.vlgmr.msra.gmra.mrb[8].mxu1 %v3076_v27  ;;  %2334 = vmatprep.subr.bf16.mxu0 %v2988_v33 }
  0x45   :  { %2355 = vmatpush3.bf16.msra.mxu1 %v2991_v40  ;;  %2044 = vmatprep.mubr.msk.f32.mxu1 %vm2887_vm1, %v2885_v0 }
  0x46   :  { %2356 = vmatprep.subr.bf16.mxu1 %v2886_v48 }
  0x47   :  { %2336 = vmatpush1.bf16.msra.mxu0 %v2998_v42 }
  0x48   :  { %2338 = vmatprep.subr.bf16.mxu0 %v3001_v45 }
  0x49   :  { %2358 = vmatpush3.bf16.msra.mxu1 %v3007_v51 }
  0x4a   :  { %2359 = vmatprep.subr.bf16.mxu1 %v2886_v48 }
  0x4b   :  { %2340 = vmatpush1.bf16.msra.mxu0 %v3014_v53 }
  0x4c   :  { %2342 = vmatprep.subr.bf16.mxu0 %v3017_v56 }
  0x4d   :  { %2361 = vmatpush3.bf16.msra.mxu1 %v3023_v61 }
  0x4e   :  { %2362 = vmatprep.subr.bf16.mxu1 %v2886_v48 }
  0x4f   :  { %2344 = vmatpush1.bf16.msra.mxu0 %v3030_v63 }
  0x50   :  { %2346 = vmatprep.subr.bf16.mxu0 %v3033_v3 }
  0x51   :  { %2364 = vmatpush3.bf16.msra.mxu1 %v3039_v8 }
  0x52   :  { %2365 = vmatprep.subr.bf16.mxu1 %v2886_v48 }
  0x53   :  { %2348 = vmatpush1.bf16.msra.mxu0 %v3046_v10 }
  0x54   :  { %2350 = vmatprep.subr.bf16.mxu0 %v3049_v14 }
  0x55   :  { %2367 = vmatpush3.bf16.msra.mxu1 %v3055_v19 }
  0x56   :  { %2368 = vmatprep.subr.bf16.mxu1 %v2886_v48 }
  0x57   :  { %2352 = vmatpush1.bf16.msra.mxu0 %v3062_v21 }
  0x58   :  { %2378 = vmatprep.subr.bf16.mxu0 %v2955_v12 }
  0x59   :  { %2370 = vmatpush3.bf16.msra.mxu1 %v3069_v26 }
  0x5a   :  { %2371 = vmatprep.subr.bf16.mxu1 %v2886_v48 }
  0x5d   :  { %2373 = vmatpush3.bf16.msra.mxu1 %v3084_v30 }
  0x5e   :  { %2374 = vmatprep.subr.bf16.mxu1 %v2886_v48 }
  0x61   :  { %2376 = vmatpush3.bf16.msra.mxu1 %v3093_v35 }
  0x62   :  { %2409 = vmatprep.subr.bf16.mxu1 %v2886_v48 }
  0xf7   :  { %v1967_v43 = vpop.f32.mrb[0].mxu1 }
  0xf8   :  { %v3134_v44 = vadd.f32 %v1967_v43, %v126_v41  ;;  %v334_v46 = vpop.f32.mrb[1].mxu1 }
  0xf9   :  { %v335_v37 = vadd.f32 %v334_v46, %v126_v41 }
  0xfb   :  { %v1970_v47 = vpop.f32.mrb[2].mxu1 }
  0xfc   :  { %v3136_v49 = vadd.f32 %v1970_v47, %v126_v41  ;;  %v344_v50 = vpop.f32.mrb[3].mxu1 }
  0xfd   :  { %v3138_v52 = vadd.f32 %v344_v50, %v126_v41 }
  0xff   :  { %v1973_v55 = vpop.f32.mrb[4].mxu1 }
 0x100   :  { %v3140_v57 = vadd.f32 %v1973_v55, %v126_v41  ;;  %v354_v58 = vpop.f32.mrb[5].mxu1 }
 0x101   :  { %v3144_v60 = vadd.f32 %v354_v58, %v126_v41 }
 0x103   :  { %v1976_v62 = vpop.f32.mrb[6].mxu1 }
 0x104   :  { %v3146_v2 = vadd.f32 %v1976_v62, %v126_v41  ;;  %v364_v4 = vpop.f32.mrb[7].mxu1 }
 0x105   :  { %v3149_v9 = vadd.f32 %v364_v4, %v126_v41 }
 0x10d   :  { %v470_v1 = vpop.f32.mrb[0].mxu0 }
 0x10e   :  { %v2713_v5 = vadd.f32 %v470_v1, %v3142_v59  ;;  %v472_v7 = vpop.f32.mrb[1].mxu0 }
 0x10f   :  { %v2714_v17 = vadd.f32 %v472_v7, %v3151_v13 }
 0x110   :  { %v1799_v11 = vmul.f32 -1.442695, %v2713_v5 }
 0x111   :  { %v1800_v24 = vmul.f32 -1.442695, %v2714_v17 }
 0x112   :  { %2754 = vpow2.f32 %v1799_v11 }
 0x113   :  { %2756 = vpow2.f32 %v1800_v24 }
 0x117   :  { %v541_v18 = vpop.f32.mrb[8].mxu1 }
 0x118   :  { %v2011_v20 = vpop.f32.mrb[9].mxu1  ;;  %v559_v32 = vadd.f32 %v3157_v29, %v541_v18 }
 0x11c   :  { %v2755_v25 = vpop.eup %2754 }
 0x11d   :  { %v549_v28 = vadd.f32 1.0, %v2755_v25  ;;  %v2757_v34 = vpop.eup %2756 }
 0x11e   :  { %v556_v39 = vadd.f32 1.0, %v2757_v34 }
 0x11f   :  { %2758 = vrcp.f32 %v549_v28 }
 0x129   :  { %v2759_v36 = vpop.eup %2758 }
 0x12a   :  { %v560_v38 = vmul.f32 %v2759_v36, %v559_v32 }
 0x12c   :  { %v561_v43 = vadd.f32 %v560_v38, %v335_v37 }
 0x12e   :  { %2760 = vtanh.f32 %v561_v43 }
 0x12f   :  { %2762 = vrcp.f32 %v556_v39 }
 0x138   :  { %v2761_v47 = vpop.eup %2760 }
 0x139   :  { %v563_v50 = vsub.f32 %v3076_v27, %v2761_v47  ;;  %v2763_v54 = vpop.eup %2762 }
 0x13b   :  { %v564_v55 = vmul.f32 %v2763_v54, %v563_v50 }
 0x13d   :  { %v3161_v58 = vadd.f32 %v2761_v47, %v564_v55 }
 0x13f   :  { %566 = vst [vmem:[#allocation7] sm:$0xff] %v3161_v58  ;;  %638 = vmatmul.mubr.f32.vlgmr.msra.gmra.mrb[2].mxu0 %v3161_v58  ;;  %2045 = vmatmul.mubr.f32.vlgmr.msra.gmra.mrb[10].mxu1 %v3161_v58 }
 0x140   :  { %2380 = vmatpush1.bf16.msra.mxu0 %v2957_v15  ;;  %2411 = vmatpush3.bf16.msra.mxu1 %v2991_v40 }
 0x141   :  { %2382 = vmatprep.subr.bf16.mxu0 %v2960_v16  ;;  %2412 = vmatprep.subr.bf16.mxu1 %v2886_v48 }
 0x142   :  { %807 = vmatprep.mubr.f32.mxu0 %v2885_v0  ;;  %2079 = vmatprep.mubr.msk.f32.mxu1 %vm2887_vm1, %v2885_v0 }
 0x144   :  { %2384 = vmatpush1.bf16.msra.mxu0 %v2968_v22  ;;  %2414 = vmatpush3.bf16.msra.mxu1 %v3007_v51 }
 0x145   :  { %2386 = vmatprep.subr.bf16.mxu0 %v2971_v23  ;;  %2415 = vmatprep.subr.bf16.mxu1 %v2886_v48 }
 0x148   :  { %2388 = vmatpush1.bf16.msra.mxu0 %v2985_v31  ;;  %2417 = vmatpush3.bf16.msra.mxu1 %v3023_v61 }
 0x149   :  { %2390 = vmatprep.subr.bf16.mxu0 %v2988_v33  ;;  %2418 = vmatprep.subr.bf16.mxu1 %v2886_v48 }
 0x14c   :  { %2392 = vmatpush1.bf16.msra.mxu0 %v2998_v42  ;;  %2420 = vmatpush3.bf16.msra.mxu1 %v3039_v8 }
 0x14d   :  { %2394 = vmatprep.subr.bf16.mxu0 %v3001_v45  ;;  %2421 = vmatprep.subr.bf16.mxu1 %v2886_v48 }
 0x150   :  { %2396 = vmatpush1.bf16.msra.mxu0 %v3014_v53  ;;  %2423 = vmatpush3.bf16.msra.mxu1 %v3055_v19 }
 0x151   :  { %2398 = vmatprep.subr.bf16.mxu0 %v3017_v56  ;;  %2424 = vmatprep.subr.bf16.mxu1 %v2886_v48 }
 0x154   :  { %2400 = vmatpush1.bf16.msra.mxu0 %v3030_v63  ;;  %2426 = vmatpush3.bf16.msra.mxu1 %v3069_v26 }
 0x155   :  { %2402 = vmatprep.subr.bf16.mxu0 %v3033_v3  ;;  %2427 = vmatprep.subr.bf16.mxu1 %v2886_v48 }
 0x158   :  { %2404 = vmatpush1.bf16.msra.mxu0 %v3046_v10  ;;  %2429 = vmatpush3.bf16.msra.mxu1 %v3084_v30 }
 0x159   :  { %2406 = vmatprep.subr.bf16.mxu0 %v3049_v14  ;;  %2430 = vmatprep.subr.bf16.mxu1 %v2886_v48 }
 0x15c   :  { %2408 = vmatpush1.bf16.msra.mxu0 %v3062_v21  ;;  %2432 = vmatpush3.bf16.msra.mxu1 %v3093_v35 }
 0x15d   :  { %2434 = vmatprep.subr.bf16.mxu0 %v2955_v12  ;;  %2465 = vmatprep.subr.bf16.mxu1 %v2886_v48 }
 0x212   :  { %v639_v27 = vpop.f32.mrb[2].mxu0  ;;  %v710_v41 = vpop.f32.mrb[10].mxu1 }
 0x213   :  { %v2715_v46 = vadd.f32 %v639_v27, %v3142_v59  ;;  %v641_v62 = vpop.f32.mrb[3].mxu0  ;;  %v2046_v1 = vpop.f32.mrb[11].mxu1  ;;  %v728_v18 = vadd.f32 %v3157_v29, %v710_v41 }
 0x214   :  { %v2716_v5 = vadd.f32 %v641_v62, %v3151_v13 }
 0x215   :  { %v1801_v4 = vmul.f32 -1.442695, %v2715_v46 }
 0x216   :  { %v1802_v6 = vmul.f32 -1.442695, %v2716_v5 }
 0x217   :  { %2764 = vpow2.f32 %v1801_v4 }
 0x218   :  { %2766 = vpow2.f32 %v1802_v6 }
 0x221   :  { %v2765_v7 = vpop.eup %2764 }
 0x222   :  { %v718_v11 = vadd.f32 1.0, %v2765_v7  ;;  %v2767_v17 = vpop.eup %2766 }
 0x223   :  { %v725_v28 = vadd.f32 1.0, %v2767_v17 }
 0x224   :  { %2768 = vrcp.f32 %v718_v11 }
 0x22e   :  { %v2769_v20 = vpop.eup %2768 }
 0x22f   :  { %v729_v24 = vmul.f32 %v2769_v20, %v728_v18 }
 0x231   :  { %v730_v25 = vadd.f32 %v729_v24, %v3134_v44 }
 0x233   :  { %2770 = vtanh.f32 %v730_v25 }
 0x234   :  { %2772 = vrcp.f32 %v725_v28 }
 0x23d   :  { %v2771_v32 = vpop.eup %2770 }
 0x23e   :  { %v732_v34 = vsub.f32 %v3161_v58, %v2771_v32  ;;  %v2773_v36 = vpop.eup %2772 }
 0x240   :  { %v733_v37 = vmul.f32 %v2773_v36, %v732_v34 }
 0x242   :  { %v3206_v38 = vadd.f32 %v2771_v32, %v733_v37 }
 0x244   :  { %736 = vst [vmem:[#allocation7 + $0x8] sm:$0xff] %v3206_v38  ;;  %808 = vmatmul.mubr.f32.vlgmr.msra.gmra.mrb[4].mxu0 %v3206_v38  ;;  %2080 = vmatmul.mubr.f32.vlgmr.msra.gmra.mrb[12].mxu1 %v3206_v38 }
 0x245   :  { %2436 = vmatpush1.bf16.msra.mxu0 %v2957_v15  ;;  %2467 = vmatpush3.bf16.msra.mxu1 %v2991_v40 }
 0x246   :  { %2438 = vmatprep.subr.bf16.mxu0 %v2960_v16  ;;  %2468 = vmatprep.subr.bf16.mxu1 %v2886_v48 }
 0x247   :  { %977 = vmatprep.mubr.f32.mxu0 %v2885_v0  ;;  %2114 = vmatprep.mubr.msk.f32.mxu1 %vm2887_vm1, %v2885_v0 }
 0x249   :  { %2440 = vmatpush1.bf16.msra.mxu0 %v2968_v22  ;;  %2470 = vmatpush3.bf16.msra.mxu1 %v3007_v51 }
 0x24a   :  { %2442 = vmatprep.subr.bf16.mxu0 %v2971_v23  ;;  %2471 = vmatprep.subr.bf16.mxu1 %v2886_v48 }
 0x24d   :  { %2444 = vmatpush1.bf16.msra.mxu0 %v2985_v31  ;;  %2473 = vmatpush3.bf16.msra.mxu1 %v3023_v61 }
 0x24e   :  { %2446 = vmatprep.subr.bf16.mxu0 %v2988_v33  ;;  %2474 = vmatprep.subr.bf16.mxu1 %v2886_v48 }
 0x251   :  { %2448 = vmatpush1.bf16.msra.mxu0 %v2998_v42  ;;  %2476 = vmatpush3.bf16.msra.mxu1 %v3039_v8 }
 0x252   :  { %2450 = vmatprep.subr.bf16.mxu0 %v3001_v45  ;;  %2477 = vmatprep.subr.bf16.mxu1 %v2886_v48 }
 0x255   :  { %2452 = vmatpush1.bf16.msra.mxu0 %v3014_v53  ;;  %2479 = vmatpush3.bf16.msra.mxu1 %v3055_v19 }
 0x256   :  { %2454 = vmatprep.subr.bf16.mxu0 %v3017_v56  ;;  %2480 = vmatprep.subr.bf16.mxu1 %v2886_v48 }
 0x259   :  { %2456 = vmatpush1.bf16.msra.mxu0 %v3030_v63  ;;  %2482 = vmatpush3.bf16.msra.mxu1 %v3069_v26 }
 0x25a   :  { %2458 = vmatprep.subr.bf16.mxu0 %v3033_v3  ;;  %2483 = vmatprep.subr.bf16.mxu1 %v2886_v48 }
 0x25d   :  { %2460 = vmatpush1.bf16.msra.mxu0 %v3046_v10  ;;  %2485 = vmatpush3.bf16.msra.mxu1 %v3084_v30 }
 0x25e   :  { %2462 = vmatprep.subr.bf16.mxu0 %v3049_v14  ;;  %2486 = vmatprep.subr.bf16.mxu1 %v2886_v48 }
 0x261   :  { %2464 = vmatpush1.bf16.msra.mxu0 %v3062_v21  ;;  %2488 = vmatpush3.bf16.msra.mxu1 %v3093_v35 }
 0x262   :  { %2490 = vmatprep.subr.bf16.mxu0 %v2955_v12  ;;  %2521 = vmatprep.subr.bf16.mxu1 %v2886_v48 }
 0x317   :  { %v809_v44 = vpop.f32.mrb[4].mxu0  ;;  %v880_v39 = vpop.f32.mrb[12].mxu1 }
 0x318   :  { %v2717_v43 = vadd.f32 %v809_v44, %v3142_v59  ;;  %v811_v47 = vpop.f32.mrb[5].mxu0  ;;  %v2081_v50 = vpop.f32.mrb[13].mxu1  ;;  %v898_v62 = vadd.f32 %v3157_v29, %v880_v39 }
 0x319   :  { %v2718_v55 = vadd.f32 %v811_v47, %v3151_v13 }
 0x31a   :  { %v1803_v54 = vmul.f32 -1.442695, %v2717_v43 }
 0x31b   :  { %v1804_v58 = vmul.f32 -1.442695, %v2718_v55 }
 0x31c   :  { %2774 = vpow2.f32 %v1803_v54 }
 0x31d   :  { %2776 = vpow2.f32 %v1804_v58 }
 0x326   :  { %v2775_v27 = vpop.eup %2774 }
 0x327   :  { %v888_v41 = vadd.f32 1.0, %v2775_v27  ;;  %v2777_v46 = vpop.eup %2776 }
 0x328   :  { %v895_v6 = vadd.f32 1.0, %v2777_v46 }
 0x329   :  { %2778 = vrcp.f32 %v888_v41 }
 0x333   :  { %v2779_v1 = vpop.eup %2778 }
 0x334   :  { %v899_v4 = vmul.f32 %v2779_v1, %v898_v62 }
 0x336   :  { %v900_v5 = vadd.f32 %v899_v4, %v3138_v52 }
 0x338   :  { %2780 = vtanh.f32 %v900_v5 }
 0x339   :  { %2782 = vrcp.f32 %v895_v6 }
 0x342   :  { %v2781_v7 = vpop.eup %2780 }
 0x343   :  { %v902_v11 = vsub.f32 %v3206_v38, %v2781_v7  ;;  %v2783_v17 = vpop.eup %2782 }
 0x345   :  { %v903_v18 = vmul.f32 %v2783_v17, %v902_v11 }
 0x347   :  { %v3251_v20 = vadd.f32 %v2781_v7, %v903_v18 }
 0x349   :  { %906 = vst [vmem:[#allocation7 + $0x10] sm:$0xff] %v3251_v20  ;;  %978 = vmatmul.mubr.f32.vlgmr.msra.gmra.mrb[6].mxu0 %v3251_v20  ;;  %2115 = vmatmul.mubr.f32.vlgmr.msra.gmra.mrb[14].mxu1 %v3251_v20 }
 0x34a   :  { %2492 = vmatpush1.bf16.msra.mxu0 %v2957_v15  ;;  %2523 = vmatpush3.bf16.msra.mxu1 %v2991_v40 }
 0x34b   :  { %2494 = vmatprep.subr.bf16.mxu0 %v2960_v16  ;;  %2524 = vmatprep.subr.bf16.mxu1 %v2886_v48 }
 0x34c   :  { %1147 = vmatprep.mubr.f32.mxu0 %v2885_v0  ;;  %2149 = vmatprep.mubr.msk.f32.mxu1 %vm2887_vm1, %v2885_v0 }
 0x34e   :  { %2496 = vmatpush1.bf16.msra.mxu0 %v2968_v22  ;;  %2526 = vmatpush3.bf16.msra.mxu1 %v3007_v51 }
 0x34f   :  { %2498 = vmatprep.subr.bf16.mxu0 %v2971_v23  ;;  %2527 = vmatprep.subr.bf16.mxu1 %v2886_v48 }
 0x352   :  { %2500 = vmatpush1.bf16.msra.mxu0 %v2985_v31  ;;  %2529 = vmatpush3.bf16.msra.mxu1 %v3023_v61 }
 0x353   :  { %2502 = vmatprep.subr.bf16.mxu0 %v2988_v33  ;;  %2530 = vmatprep.subr.bf16.mxu1 %v2886_v48 }
 0x356   :  { %2504 = vmatpush1.bf16.msra.mxu0 %v2998_v42  ;;  %2532 = vmatpush3.bf16.msra.mxu1 %v3039_v8 }
 0x357   :  { %2506 = vmatprep.subr.bf16.mxu0 %v3001_v45  ;;  %2533 = vmatprep.subr.bf16.mxu1 %v2886_v48 }
 0x35a   :  { %2508 = vmatpush1.bf16.msra.mxu0 %v3014_v53  ;;  %2535 = vmatpush3.bf16.msra.mxu1 %v3055_v19 }
 0x35b   :  { %2510 = vmatprep.subr.bf16.mxu0 %v3017_v56  ;;  %2536 = vmatprep.subr.bf16.mxu1 %v2886_v48 }
 0x35e   :  { %2512 = vmatpush1.bf16.msra.mxu0 %v3030_v63  ;;  %2538 = vmatpush3.bf16.msra.mxu1 %v3069_v26 }
 0x35f   :  { %2514 = vmatprep.subr.bf16.mxu0 %v3033_v3  ;;  %2539 = vmatprep.subr.bf16.mxu1 %v2886_v48 }
 0x362   :  { %2516 = vmatpush1.bf16.msra.mxu0 %v3046_v10  ;;  %2541 = vmatpush3.bf16.msra.mxu1 %v3084_v30 }
 0x363   :  { %2518 = vmatprep.subr.bf16.mxu0 %v3049_v14  ;;  %2542 = vmatprep.subr.bf16.mxu1 %v2886_v48 }
 0x366   :  { %2520 = vmatpush1.bf16.msra.mxu0 %v3062_v21  ;;  %2544 = vmatpush3.bf16.msra.mxu1 %v3093_v35 }
 0x367   :  { %2546 = vmatprep.subr.bf16.mxu0 %v2955_v12  ;;  %2577 = vmatprep.subr.bf16.mxu1 %v2886_v48 }
 0x41c   :  { %v979_v52 = vpop.f32.mrb[6].mxu0  ;;  %v1050_v24 = vpop.f32.mrb[14].mxu1 }
 0x41d   :  { %v2719_v25 = vadd.f32 %v979_v52, %v3142_v59  ;;  %v981_v28 = vpop.f32.mrb[7].mxu0  ;;  %v2116_v32 = vpop.f32.mrb[15].mxu1  ;;  %v1068_v43 = vadd.f32 %v3157_v29, %v1050_v24 }
 0x41e   :  { %v2720_v36 = vadd.f32 %v981_v28, %v3151_v13 }
 0x41f   :  { %v1805_v34 = vmul.f32 -1.442695, %v2719_v25 }
 0x420   :  { %v1806_v37 = vmul.f32 -1.442695, %v2720_v36 }
 0x421   :  { %2784 = vpow2.f32 %v1805_v34 }
 0x422   :  { %2786 = vpow2.f32 %v1806_v37 }
 0x42b   :  { %v2785_v38 = vpop.eup %2784 }
 0x42c   :  { %v1058_v44 = vadd.f32 1.0, %v2785_v38  ;;  %v2787_v39 = vpop.eup %2786 }
 0x42d   :  { %v1065_v55 = vadd.f32 1.0, %v2787_v39 }
 0x42e   :  { %2788 = vrcp.f32 %v1058_v44 }
 0x438   :  { %v2789_v47 = vpop.eup %2788 }
 0x439   :  { %v1069_v50 = vmul.f32 %v2789_v47, %v1068_v43 }
 0x43b   :  { %v1070_v54 = vadd.f32 %v1069_v50, %v3136_v49 }
 0x43d   :  { %2790 = vtanh.f32 %v1070_v54 }
 0x43e   :  { %2792 = vrcp.f32 %v1065_v55 }
 0x447   :  { %v2791_v58 = vpop.eup %2790 }
 0x448   :  { %v1072_v27 = vsub.f32 %v3251_v20, %v2791_v58  ;;  %v2793_v41 = vpop.eup %2792 }
 0x44a   :  { %v1073_v46 = vmul.f32 %v2793_v41, %v1072_v27 }
 0x44c   :  { %v3296_v62 = vadd.f32 %v2791_v58, %v1073_v46 }
 0x44e   :  { %1076 = vst [vmem:[#allocation7 + $0x18] sm:$0xff] %v3296_v62  ;;  %1148 = vmatmul.mubr.f32.vlgmr.msra.gmra.mrb[8].mxu0 %v3296_v62  ;;  %2150 = vmatmul.mubr.f32.vlgmr.msra.gmra.mrb[16].mxu1 %v3296_v62 }
 0x44f   :  { %2548 = vmatpush1.bf16.msra.mxu0 %v2957_v15  ;;  %2579 = vmatpush3.bf16.msra.mxu1 %v2991_v40 }
 0x450   :  { %2550 = vmatprep.subr.bf16.mxu0 %v2960_v16  ;;  %2580 = vmatprep.subr.bf16.mxu1 %v2886_v48 }
 0x451   :  { %1317 = vmatprep.mubr.f32.mxu0 %v2885_v0  ;;  %2184 = vmatprep.mubr.msk.f32.mxu1 %vm2887_vm1, %v2885_v0 }
 0x453   :  { %2552 = vmatpush1.bf16.msra.mxu0 %v2968_v22  ;;  %2582 = vmatpush3.bf16.msra.mxu1 %v3007_v51 }
 0x454   :  { %2554 = vmatprep.subr.bf16.mxu0 %v2971_v23  ;;  %2583 = vmatprep.subr.bf16.mxu1 %v2886_v48 }
 0x457   :  { %2556 = vmatpush1.bf16.msra.mxu0 %v2985_v31  ;;  %2585 = vmatpush3.bf16.msra.mxu1 %v3023_v61 }
 0x458   :  { %2558 = vmatprep.subr.bf16.mxu0 %v2988_v33  ;;  %2586 = vmatprep.subr.bf16.mxu1 %v2886_v48 }
 0x45b   :  { %2560 = vmatpush1.bf16.msra.mxu0 %v2998_v42  ;;  %2588 = vmatpush3.bf16.msra.mxu1 %v3039_v8 }
 0x45c   :  { %2562 = vmatprep.subr.bf16.mxu0 %v3001_v45  ;;  %2589 = vmatprep.subr.bf16.mxu1 %v2886_v48 }
 0x45f   :  { %2564 = vmatpush1.bf16.msra.mxu0 %v3014_v53  ;;  %2591 = vmatpush3.bf16.msra.mxu1 %v3055_v19 }
 0x460   :  { %2566 = vmatprep.subr.bf16.mxu0 %v3017_v56  ;;  %2592 = vmatprep.subr.bf16.mxu1 %v2886_v48 }
 0x463   :  { %2568 = vmatpush1.bf16.msra.mxu0 %v3030_v63  ;;  %2594 = vmatpush3.bf16.msra.mxu1 %v3069_v26 }
 0x464   :  { %2570 = vmatprep.subr.bf16.mxu0 %v3033_v3  ;;  %2595 = vmatprep.subr.bf16.mxu1 %v2886_v48 }
 0x467   :  { %2572 = vmatpush1.bf16.msra.mxu0 %v3046_v10  ;;  %2597 = vmatpush3.bf16.msra.mxu1 %v3084_v30 }
 0x468   :  { %2574 = vmatprep.subr.bf16.mxu0 %v3049_v14  ;;  %2598 = vmatprep.subr.bf16.mxu1 %v2886_v48 }
 0x46b   :  { %2576 = vmatpush1.bf16.msra.mxu0 %v3062_v21  ;;  %2600 = vmatpush3.bf16.msra.mxu1 %v3093_v35 }
 0x46c   :  { %2602 = vmatprep.subr.bf16.mxu0 %v2955_v12  ;;  %2633 = vmatprep.subr.bf16.mxu1 %v2886_v48 }
 0x521   :  { %v1149_v49 = vpop.f32.mrb[8].mxu0  ;;  %v1220_v1 = vpop.f32.mrb[16].mxu1 }
 0x522   :  { %v2721_v4 = vadd.f32 %v1149_v49, %v3142_v59  ;;  %v1151_v5 = vpop.f32.mrb[9].mxu0  ;;  %v2151_v6 = vpop.f32.mrb[17].mxu1  ;;  %v1238_v24 = vadd.f32 %v3157_v29, %v1220_v1 }
 0x523   :  { %v2722_v11 = vadd.f32 %v1151_v5, %v3151_v13 }
 0x524   :  { %v1807_v7 = vmul.f32 -1.442695, %v2721_v4 }
 0x525   :  { %v1808_v17 = vmul.f32 -1.442695, %v2722_v11 }
 0x526   :  { %2794 = vpow2.f32 %v1807_v7 }
 0x527   :  { %2796 = vpow2.f32 %v1808_v17 }
 0x530   :  { %v2795_v18 = vpop.eup %2794 }
 0x531   :  { %v1228_v20 = vadd.f32 1.0, %v2795_v18  ;;  %v2797_v52 = vpop.eup %2796 }
 0x532   :  { %v1235_v34 = vadd.f32 1.0, %v2797_v52 }
 0x533   :  { %2798 = vrcp.f32 %v1228_v20 }
 0x53d   :  { %v2799_v25 = vpop.eup %2798 }
 0x53e   :  { %v1239_v28 = vmul.f32 %v2799_v25, %v1238_v24 }
 0x540   :  { %v1240_v32 = vadd.f32 %v1239_v28, %v3144_v60 }
 0x542   :  { %2800 = vtanh.f32 %v1240_v32 }
 0x543   :  { %2802 = vrcp.f32 %v1235_v34 }
 0x54c   :  { %v2801_v36 = vpop.eup %2800 }
 0x54d   :  { %v1242_v37 = vsub.f32 %v3296_v62, %v2801_v36  ;;  %v2803_v38 = vpop.eup %2802 }
 0x54f   :  { %v1243_v44 = vmul.f32 %v2803_v38, %v1242_v37 }
 0x551   :  { %v3341_v39 = vadd.f32 %v2801_v36, %v1243_v44 }
 0x553   :  { %1246 = vst [vmem:[#allocation7 + $0x20] sm:$0xff] %v3341_v39  ;;  %1318 = vmatmul.mubr.f32.vlgmr.msra.gmra.mrb[10].mxu0 %v3341_v39  ;;  %2185 = vmatmul.mubr.f32.vlgmr.msra.gmra.mrb[18].mxu1 %v3341_v39 }
 0x554   :  { %2604 = vmatpush1.bf16.msra.mxu0 %v2957_v15  ;;  %2635 = vmatpush3.bf16.msra.mxu1 %v2991_v40 }
 0x555   :  { %2606 = vmatprep.subr.bf16.mxu0 %v2960_v16  ;;  %2636 = vmatprep.subr.bf16.mxu1 %v2886_v48 }
 0x556   :  { %1487 = vmatprep.mubr.f32.mxu0 %v2885_v0  ;;  %2219 = vmatprep.mubr.msk.f32.mxu1 %vm2887_vm1, %v2885_v0 }
 0x558   :  { %2608 = vmatpush1.bf16.msra.mxu0 %v2968_v22  ;;  %2638 = vmatpush3.bf16.msra.mxu1 %v3007_v51 }
 0x559   :  { %2610 = vmatprep.subr.bf16.mxu0 %v2971_v23  ;;  %2639 = vmatprep.subr.bf16.mxu1 %v2886_v48 }
 0x55c   :  { %2612 = vmatpush1.bf16.msra.mxu0 %v2985_v31  ;;  %2641 = vmatpush3.bf16.msra.mxu1 %v3023_v61 }
 0x55d   :  { %2614 = vmatprep.subr.bf16.mxu0 %v2988_v33  ;;  %2642 = vmatprep.subr.bf16.mxu1 %v2886_v48 }
 0x560   :  { %2616 = vmatpush1.bf16.msra.mxu0 %v2998_v42  ;;  %2644 = vmatpush3.bf16.msra.mxu1 %v3039_v8 }
 0x561   :  { %2618 = vmatprep.subr.bf16.mxu0 %v3001_v45  ;;  %2645 = vmatprep.subr.bf16.mxu1 %v2886_v48 }
 0x564   :  { %2620 = vmatpush1.bf16.msra.mxu0 %v3014_v53  ;;  %2647 = vmatpush3.bf16.msra.mxu1 %v3055_v19 }
 0x565   :  { %2622 = vmatprep.subr.bf16.mxu0 %v3017_v56  ;;  %2648 = vmatprep.subr.bf16.mxu1 %v2886_v48 }
 0x568   :  { %2624 = vmatpush1.bf16.msra.mxu0 %v3030_v63  ;;  %2650 = vmatpush3.bf16.msra.mxu1 %v3069_v26 }
 0x569   :  { %2626 = vmatprep.subr.bf16.mxu0 %v3033_v3  ;;  %2651 = vmatprep.subr.bf16.mxu1 %v2886_v48 }
 0x56c   :  { %2628 = vmatpush1.bf16.msra.mxu0 %v3046_v10  ;;  %2653 = vmatpush3.bf16.msra.mxu1 %v3084_v30 }
 0x56d   :  { %2630 = vmatprep.subr.bf16.mxu0 %v3049_v14  ;;  %2654 = vmatprep.subr.bf16.mxu1 %v2886_v48 }
 0x570   :  { %2632 = vmatpush1.bf16.msra.mxu0 %v3062_v21  ;;  %2656 = vmatpush3.bf16.msra.mxu1 %v3093_v35 }
 0x571   :  { %2658 = vmatprep.subr.bf16.mxu0 %v2955_v12  ;;  %2689 = vmatprep.subr.bf16.mxu1 %v2886_v48 }
 0x626   :  { %v1319_v60 = vpop.f32.mrb[10].mxu0  ;;  %v1390_v43 = vpop.f32.mrb[18].mxu1 }
 0x627   :  { %v2723_v47 = vadd.f32 %v1319_v60, %v3142_v59  ;;  %v1321_v50 = vpop.f32.mrb[11].mxu0  ;;  %v2186_v54 = vpop.f32.mrb[19].mxu1  ;;  %v1408_v12 = vadd.f32 %v3157_v29, %v1390_v43 }
 0x628   :  { %v2724_v58 = vadd.f32 %v1321_v50, %v3151_v13 }
 0x629   :  { %v1809_v55 = vmul.f32 -1.442695, %v2723_v47 }
 0x62a   :  { %v1810_v27 = vmul.f32 -1.442695, %v2724_v58 }
 0x62b   :  { %2804 = vpow2.f32 %v1809_v55 }
 0x62c   :  { %2806 = vpow2.f32 %v1810_v27 }
 0x635   :  { %v2805_v41 = vpop.eup %2804 }
 0x636   :  { %v1398_v46 = vadd.f32 1.0, %v2805_v41  ;;  %v2807_v62 = vpop.eup %2806 }
 0x637   :  { %v1405_v5 = vadd.f32 1.0, %v2807_v62 }
 0x638   :  { %2808 = vrcp.f32 %v1398_v46 }
 0x642   :  { %v2809_v49 = vpop.eup %2808 }
 0x643   :  { %v1409_v1 = vmul.f32 %v2809_v49, %v1408_v12 }
 0x645   :  { %v1410_v4 = vadd.f32 %v1409_v1, %v3140_v57 }
 0x647   :  { %2810 = vtanh.f32 %v1410_v4 }
 0x648   :  { %2812 = vrcp.f32 %v1405_v5 }
 0x651   :  { %v2811_v6 = vpop.eup %2810 }
 0x652   :  { %v1412_v7 = vsub.f32 %v3341_v39, %v2811_v6  ;;  %v2813_v11 = vpop.eup %2812 }
 0x654   :  { %v1413_v17 = vmul.f32 %v2813_v11, %v1412_v7 }
 0x656   :  { %v1414_v18 = vadd.f32 %v2811_v6, %v1413_v17 }
 0x658   :  { %1416 = vst [vmem:[#allocation7 + $0x28] sm:$0xff] %v1414_v18  ;;  %1488 = vmatmul.mubr.f32.vlgmr.msra.gmra.mrb[12].mxu0 %v1414_v18  ;;  %2220 = vmatmul.mubr.f32.vlgmr.msra.gmra.mrb[20].mxu1 %v1414_v18 }
 0x659   :  { %2660 = vmatpush1.bf16.msra.mxu0 %v2957_v15  ;;  %2691 = vmatpush3.bf16.msra.mxu1 %v2991_v40 }
 0x65a   :  { %2662 = vmatprep.subr.bf16.mxu0 %v2960_v16  ;;  %2692 = vmatprep.subr.bf16.mxu1 %v2886_v48 }
 0x65b   :  { %1657 = vmatprep.mubr.f32.mxu0 %v2885_v0  ;;  %2254 = vmatprep.mubr.msk.f32.mxu1 %vm2887_vm1, %v2885_v0 }
 0x65d   :  { %2664 = vmatpush1.bf16.msra.mxu0 %v2968_v22  ;;  %2694 = vmatpush3.bf16.msra.mxu1 %v3007_v51 }
 0x65e   :  { %2666 = vmatprep.subr.bf16.mxu0 %v2971_v23  ;;  %2695 = vmatprep.subr.bf16.mxu1 %v2886_v48 }
 0x661   :  { %2668 = vmatpush1.bf16.msra.mxu0 %v2985_v31  ;;  %2697 = vmatpush3.bf16.msra.mxu1 %v3023_v61 }
 0x662   :  { %2670 = vmatprep.subr.bf16.mxu0 %v2988_v33  ;;  %2698 = vmatprep.subr.bf16.mxu1 %v2886_v48 }
 0x665   :  { %2672 = vmatpush1.bf16.msra.mxu0 %v2998_v42  ;;  %2700 = vmatpush3.bf16.msra.mxu1 %v3039_v8 }
 0x666   :  { %2674 = vmatprep.subr.bf16.mxu0 %v3001_v45  ;;  %2701 = vmatprep.subr.bf16.mxu1 %v2886_v48 }
 0x669   :  { %2676 = vmatpush1.bf16.msra.mxu0 %v3014_v53  ;;  %2703 = vmatpush3.bf16.msra.mxu1 %v3055_v19 }
 0x66a   :  { %2678 = vmatprep.subr.bf16.mxu0 %v3017_v56  ;;  %2704 = vmatprep.subr.bf16.mxu1 %v2886_v48 }
 0x66d   :  { %2680 = vmatpush1.bf16.msra.mxu0 %v3030_v63  ;;  %2706 = vmatpush3.bf16.msra.mxu1 %v3069_v26 }
 0x66e   :  { %2682 = vmatprep.subr.bf16.mxu0 %v3033_v3  ;;  %2707 = vmatprep.subr.bf16.mxu1 %v2886_v48 }
 0x671   :  { %2684 = vmatpush1.bf16.msra.mxu0 %v3046_v10  ;;  %2709 = vmatpush3.bf16.msra.mxu1 %v3084_v30 }
 0x672   :  { %2686 = vmatprep.subr.bf16.mxu0 %v3049_v14  ;;  %2710 = vmatprep.subr.bf16.mxu1 %v2886_v48 }
 0x675   :  { %2688 = vmatpush1.bf16.msra.mxu0 %v3062_v21  ;;  %2712 = vmatpush3.bf16.msra.mxu1 %v3093_v35 }
 0x72b   :  { %v1489_v0 = vpop.f32.mrb[12].mxu0  ;;  %v1560_v15 = vpop.f32.mrb[20].mxu1 }
 0x72c   :  { %v2725_v16 = vadd.f32 %v1489_v0, %v3142_v59  ;;  %v1491_v22 = vpop.f32.mrb[13].mxu0  ;;  %v2221_v23 = vpop.f32.mrb[21].mxu1  ;;  %v1578_v51 = vadd.f32 %v3157_v29, %v1560_v15 }
 0x72d   :  { %v2726_v33 = vadd.f32 %v1491_v22, %v3151_v13 }
 0x72e   :  { %v1811_v31 = vmul.f32 -1.442695, %v2725_v16 }
 0x72f   :  { %v1812_v40 = vmul.f32 -1.442695, %v2726_v33 }
 0x730   :  { %2814 = vpow2.f32 %v1811_v31 }
 0x731   :  { %2816 = vpow2.f32 %v1812_v40 }
 0x73a   :  { %v2815_v42 = vpop.eup %2814 }
 0x73b   :  { %v1568_v45 = vadd.f32 1.0, %v2815_v42  ;;  %v2817_v48 = vpop.eup %2816 }
 0x73c   :  { %v1575_v63 = vadd.f32 1.0, %v2817_v48 }
 0x73d   :  { %2818 = vrcp.f32 %v1568_v45 }
 0x747   :  { %v2819_v53 = vpop.eup %2818 }
 0x748   :  { %v1579_v56 = vmul.f32 %v2819_v53, %v1578_v51 }
 0x74a   :  { %v1580_v61 = vadd.f32 %v1579_v56, %v3149_v9 }
 0x74c   :  { %2820 = vtanh.f32 %v1580_v61 }
 0x74d   :  { %2822 = vrcp.f32 %v1575_v63 }
 0x756   :  { %v2821_v3 = vpop.eup %2820 }
 0x757   :  { %v1582_v8 = vsub.f32 %v1414_v18, %v2821_v3  ;;  %v2823_v10 = vpop.eup %2822 }
 0x759   :  { %v1583_v14 = vmul.f32 %v2823_v10, %v1582_v8 }
 0x75b   :  { %v1584_v19 = vadd.f32 %v2821_v3, %v1583_v14 }
 0x75d   :  { %1586 = vst [vmem:[#allocation7 + $0x30] sm:$0xff] %v1584_v19  ;;  %1658 = vmatmul.mubr.f32.vlgmr.msra.gmra.mrb[14].mxu0 %v1584_v19  ;;  %2255 = vmatmul.mubr.f32.vlgmr.msra.gmra.mrb[22].mxu1 %v1584_v19 }
 0x830   :  { %v1659_v21 = vpop.f32.mrb[14].mxu0  ;;  %v1730_v26 = vpop.f32.mrb[22].mxu1 }
 0x831   :  { %v2727_v30 = vadd.f32 %v1659_v21, %v3142_v59  ;;  %v1661_v35 = vpop.f32.mrb[15].mxu0  ;;  %v2256_v57 = vpop.f32.mrb[23].mxu1  ;;  %v1748_v32 = vadd.f32 %v3157_v29, %v1730_v26 }
 0x832   :  { %v2728_v9 = vadd.f32 %v1661_v35, %v3151_v13 }
 0x833   :  { %v1813_v20 = vmul.f32 -1.442695, %v2727_v30 }
 0x834   :  { %v1814_v52 = vmul.f32 -1.442695, %v2728_v9 }
 0x835   :  { %2824 = vpow2.f32 %v1813_v20 }
 0x836   :  { %2826 = vpow2.f32 %v1814_v52 }
 0x83f   :  { %v2825_v24 = vpop.eup %2824 }
 0x840   :  { %v1738_v25 = vadd.f32 1.0, %v2825_v24  ;;  %v2827_v28 = vpop.eup %2826 }
 0x841   :  { %v1745_v38 = vadd.f32 1.0, %v2827_v28 }
 0x842   :  { %2828 = vrcp.f32 %v1738_v25 }
 0x84c   :  { %v2829_v34 = vpop.eup %2828 }
 0x84d   :  { %v1749_v36 = vmul.f32 %v2829_v34, %v1748_v32 }
 0x84f   :  { %v1750_v37 = vadd.f32 %v1749_v36, %v3146_v2 }
 0x851   :  { %2830 = vtanh.f32 %v1750_v37 }
 0x852   :  { %2832 = vrcp.f32 %v1745_v38 }
 0x85b   :  { %v2831_v59 = vpop.eup %2830 }
 0x85c   :  { %v1752_v44 = vsub.f32 %v1584_v19, %v2831_v59  ;;  %v2833_v13 = vpop.eup %2832 }
 0x85e   :  { %v1753_v39 = vmul.f32 %v2833_v13, %v1752_v44 }
 0x860   :  { %v1754_v60 = vadd.f32 %v2831_v59, %v1753_v39 }
 0x862   :  { %1756 = vst [vmem:[#allocation7 + $0x38] sm:$0xff] %v1754_v60 }
 0x863   :  { %2867 = shalt.err (!%p2864_p12)
}
 0x864   :  { %s2868_s19 = scalar_lea.hbm %s3445_s6, 1024 }
 0x865   :  { %p2869_p13 = scmp.ne.s32.totalorder %s3445_s6, %s2868_s19  ;;  %p2872_p0 = scmp.lt.u32.totalorder %s2868_s19, %s3445_s6 }
 0x867   :  { %p2874_p1 = pnand %p2872_p0, %p2869_p13 }
 0x869   :  { %2877 = shalt.err (!%p2874_p1)
}
 0x86a   :  { %s2889_s24 = smov 128   ;;  %s2890_s25 = smov 8  }
 0x86b   :  { %1769 = dma.vmem_to_hbm [thread:$0]  %s1764_s16, 1024, %s3445_s6, [#allocation6], %s2889_s24, %s2889_s24, %s2890_s25  }
 0x86c   :  { %2880 = dma.done.wait [#allocation6], 1024  }
 0x86d   :  { %2881 = vsyncadd [#allocation6], 4294966272 }
 0x86e   :  { %1773 = vsyncpa [#allocation5], 1 }
 0x86f   :  { %1774 = vsyncpa [#allocation6], 1 }

</bundles_post_ra>
